<compile_context>
chip_gen: v5e
topology: v5e:2x2
jax: 0.10.0
libtpu: 0.0.40
codegen_flags: <defaults>
</compile_context>

<pallas_src>
import functools

import jax
import jax.numpy as jnp
from jax.experimental import pallas as pl
from jax.experimental.pallas import tpu as pltpu

NEG_SLOPE = 0.01  # torch.nn.LeakyReLU default negative_slope
LANE = 128        # TPU lane width; channel axis is padded to a multiple of this


def _mrf_kernel(x_ref, *refs, structure, L, Cp, pad_buf, inv_k):
    """Fully fused MRF forward for one batch element (channels-last, lane-dense).

    x_ref : (1, L, Cp) f32   input activation (channels zero-padded to Cp)
    refs  : [w_0, b_0, ..., w_{n-1}, b_{n-1}, o_ref, buf_ref]
            w_i     : (K_i*Cp, Cp) bf16  im2col-flattened conv weight
            b_i     : (1, Cp) f32        zero-padded bias
            o_ref   : (1, L, Cp)         output
            buf_ref : (L + 2*pad_buf, Cp) f32  VMEM scratch with zero halo
    """
    n_conv = sum(len(c) for blk in structure for c in blk)
    w_refs = refs[0:2 * n_conv:2]
    b_refs = refs[1:2 * n_conv:2]
    o_ref = refs[2 * n_conv]
    buf_ref = refs[2 * n_conv + 1]

    # Zero the padded scratch once; the halo rows stay zero for the whole
    # chain, the centre rows are overwritten before every read.
    buf_ref[...] = jnp.zeros_like(buf_ref)

    x = x_ref[0]                                    # (L, Cp) f32
    res = None
    ci = 0
    for res_block in structure:                     # ResidualBlock
        h = x
        for combined in res_block:                  # CombinedConvBlock
            t = h
            for (K, d) in combined:                 # LeakyReLU + dilated conv
                p = d * (K - 1) // 2                # 'same' padding (odd K)
                # LeakyReLU(0) == 0, so a zero halo is equivalent to padding
                # the activated signal (matches the nn.Sequential order).
                ta = jnp.where(t >= 0, t, NEG_SLOPE * t)
                buf_ref[pl.ds(pad_buf, L), :] = ta  # sublane-aligned store
                # im2col: K shifted views stacked on the lane axis -> one
                # (L, K*Cp) x (K*Cp, Cp) MXU matmul in bf16, f32 accumulate.
                cols = [buf_ref[pl.ds(pad_buf - p + k * d, L), :]
                        for k in range(K)]
                stack = jnp.concatenate(cols, axis=1).astype(jnp.bfloat16)
                acc = jnp.dot(stack, w_refs[ci][...],
                              preferred_element_type=jnp.float32)
                t = acc + b_refs[ci][...]           # (L, Cp) f32
                ci += 1
            h = t + h                               # fused residual add
        # NOTE: faithfully reproduces the MRF quirk `res = temp` (no
        # accumulation) -> only the last residual block's output survives.
        res = h
    o_ref[0] = (res * inv_k).astype(o_ref.dtype)    # fused final divide-by-k


def mrf_forward(x_ncl, params):
    """x_ncl: (N, C, L), matching the PyTorch module's input convention."""
    N, C, L = x_ncl.shape
    Cp = max(LANE, ((C + LANE - 1) // LANE) * LANE)

    # Channels-last + lane-dense channel padding (exact; padded channels stay 0).
    x_nlc = jnp.transpose(x_ncl, (0, 2, 1))                  # (N, L, C)
    x_p = jnp.pad(x_nlc, ((0, 0), (0, 0), (0, Cp - C)))      # (N, L, Cp)

    # Flatten parameters into kernel inputs + static (K, dilation) structure.
    structure = []
    flat_inputs = []
    in_specs = [pl.BlockSpec((1, L, Cp), lambda n: (n, 0, 0))]
    pad_max = 0
    for res_block in params:
        blk = []
        for combined in res_block:
            comb = []
            for (w, b, d) in combined:
                C_out, C_in, K = w.shape
                assert C_out == C and C_in == C
                assert K % 2 == 1, "symmetric 'same' padding requires odd K"
                pad_max = max(pad_max, d * (K - 1) // 2)
                # (C_out, C_in, K) -> (K, C_in, C_out) -> channel-pad -> (K*Cp, Cp)
                w_t = jnp.transpose(w, (2, 1, 0))
                w_p = jnp.zeros((K, Cp, Cp), jnp.float32).at[:, :C, :C].set(w_t)
                w_p = w_p.reshape(K * Cp, Cp).astype(jnp.bfloat16)
                b_p = jnp.zeros((1, Cp), jnp.float32).at[0, :C].set(b)
                flat_inputs += [w_p, b_p]
                # Constant index_maps -> weights are DMA'd once and stay
                # resident in VMEM across the (parallel) batch grid.
                in_specs.append(pl.BlockSpec((K * Cp, Cp), lambda n: (0, 0)))
                in_specs.append(pl.BlockSpec((1, Cp), lambda n: (0, 0)))
                comb.append((K, d))
            blk.append(comb)
        structure.append(blk)

    pad_buf = ((pad_max + 7) // 8) * 8       # sublane-aligned centre offset
    inv_k = 1.0 / len(params)

    kern = functools.partial(_mrf_kernel, structure=structure, L=L, Cp=Cp,
                             pad_buf=pad_buf, inv_k=inv_k)

    out = pl.pallas_call(
        kern,
        out_shape=jax.ShapeDtypeStruct((N, L, Cp), x_ncl.dtype),
        grid=(N,),
        in_specs=in_specs,
        out_specs=pl.BlockSpec((1, L, Cp), lambda n: (n, 0, 0)),
        scratch_shapes=[pltpu.VMEM((L + 2 * pad_buf, Cp), jnp.float32)],
        compiler_params=pltpu.CompilerParams(
            dimension_semantics=("parallel",)),
    )(x_p, *flat_inputs)

    out = out[..., :C]                        # drop lane padding
    return jnp.transpose(out, (0, 2, 1))      # back to (N, C, L)


def init_mrf_params(key, channels, kernel_size_config, dilation_config):
    """Deterministic synthetic parameters mirroring MRF.__init__ shapes."""
    params = []
    for i, ks in enumerate(kernel_size_config):
        res_block = []
        for dilations in dilation_config[i]:
            combined = []
            for d in dilations:
                key, kw, kb = jax.random.split(key, 3)
                w = jax.random.normal(kw, (channels, channels, ks), jnp.float32) * 0.05
                b = jax.random.normal(kb, (channels,), jnp.float32) * 0.05
                combined.append((w, b, d))
            res_block.append(combined)
        params.append(res_block)
    return params


# ----------------------- pure-JAX reference (f32) ---------------------------
def _ref_lrelu_conv(x_nlc, w, b, d):
    a = jnp.where(x_nlc >= 0, x_nlc, NEG_SLOPE * x_nlc)
    K = w.shape[2]
    pad = d * (K - 1) // 2
    out = jax.lax.conv_general_dilated(
        a, jnp.transpose(w, (2, 1, 0)),
        window_strides=(1,), padding=[(pad, pad)], rhs_dilation=(d,),
        dimension_numbers=("NLC", "LIO", "NLC"))
    return out + b[None, None, :]


def mrf_forward_ref(x_ncl, params):
    x = jnp.transpose(x_ncl, (0, 2, 1))
    res = None
    for res_block in params:
        h = x
        for combined in res_block:
            t = h
            for (w, b, d) in combined:
                t = _ref_lrelu_conv(t, w, b, d)
            h = t + h
        res = h
    return jnp.transpose(res / len(params), (0, 2, 1))


if __name__ == "__main__":
    key = jax.random.PRNGKey(0)
    channels = 32
    kernel_size_config = [3, 5]
    dilation_config = [[[1, 2], [3]], [[1], [2, 4]]]

    kx, kp = jax.random.split(key)
    x = jax.random.normal(kx, (2, channels, 16), jnp.float32)   # (N, C, L)
    params = init_mrf_params(kp, channels, kernel_size_config, dilation_config)

    out = mrf_forward(x, params)
    out = jax.block_until_ready(out)
    assert out.shape == x.shape and out.dtype == x.dtype

    ref = mrf_forward_ref(x, params)
    max_err = float(jnp.max(jnp.abs(out - ref)))
    assert bool(jnp.allclose(out, ref, rtol=5e-2, atol=5e-2)), max_err

    print("KERNEL_OK")
</pallas_src>

<mosaic_0001>
module attributes {stable_mosaic.version = 11 : i64} {
  func.func @_mrf_kernel(%arg0: i32, %arg1: memref<1x16x128xf32, #tpu.memory_space<vmem>>, %arg2: memref<384x128xbf16, #tpu.memory_space<vmem>>, %arg3: memref<1x128xf32, #tpu.memory_space<vmem>>, %arg4: memref<384x128xbf16, #tpu.memory_space<vmem>>, %arg5: memref<1x128xf32, #tpu.memory_space<vmem>>, %arg6: memref<384x128xbf16, #tpu.memory_space<vmem>>, %arg7: memref<1x128xf32, #tpu.memory_space<vmem>>, %arg8: memref<640x128xbf16, #tpu.memory_space<vmem>>, %arg9: memref<1x128xf32, #tpu.memory_space<vmem>>, %arg10: memref<640x128xbf16, #tpu.memory_space<vmem>>, %arg11: memref<1x128xf32, #tpu.memory_space<vmem>>, %arg12: memref<640x128xbf16, #tpu.memory_space<vmem>>, %arg13: memref<1x128xf32, #tpu.memory_space<vmem>>, %arg14: memref<1x16x128xf32, #tpu.memory_space<vmem>>, %arg15: memref<32x128xf32, #tpu.memory_space<vmem>>) attributes {dimension_semantics = [#tpu.dimension_semantics<parallel>], iteration_bounds = array<i64: 2>, scalar_prefetch = 0 : i64, scratch_operands = 1 : i64, tpu.core_type = #tpu.core_type<tc>, window_params = [{transform_indices = @transform_0, window_bounds = array<i64: 1, 16, 128>}, {pipeline_mode = #tpu.pipeline_mode<synchronous>, transform_indices = @transform_1, window_bounds = array<i64: 384, 128>}, {pipeline_mode = #tpu.pipeline_mode<synchronous>, transform_indices = @transform_2, window_bounds = array<i64: 1, 128>}, {pipeline_mode = #tpu.pipeline_mode<synchronous>, transform_indices = @transform_3, window_bounds = array<i64: 384, 128>}, {pipeline_mode = #tpu.pipeline_mode<synchronous>, transform_indices = @transform_4, window_bounds = array<i64: 1, 128>}, {pipeline_mode = #tpu.pipeline_mode<synchronous>, transform_indices = @transform_5, window_bounds = array<i64: 384, 128>}, {pipeline_mode = #tpu.pipeline_mode<synchronous>, transform_indices = @transform_6, window_bounds = array<i64: 1, 128>}, {pipeline_mode = #tpu.pipeline_mode<synchronous>, transform_indices = @transform_7, window_bounds = array<i64: 640, 128>}, {pipeline_mode = #tpu.pipeline_mode<synchronous>, transform_indices = @transform_8, window_bounds = array<i64: 1, 128>}, {pipeline_mode = #tpu.pipeline_mode<synchronous>, transform_indices = @transform_9, window_bounds = array<i64: 640, 128>}, {pipeline_mode = #tpu.pipeline_mode<synchronous>, transform_indices = @transform_10, window_bounds = array<i64: 1, 128>}, {pipeline_mode = #tpu.pipeline_mode<synchronous>, transform_indices = @transform_11, window_bounds = array<i64: 640, 128>}, {pipeline_mode = #tpu.pipeline_mode<synchronous>, transform_indices = @transform_12, window_bounds = array<i64: 1, 128>}, {transform_indices = @transform_13, window_bounds = array<i64: 1, 16, 128>}]} {
    %cst = arith.constant 0.000000e+00 : f32
    %0 = vector.broadcast %cst : f32 to vector<32x128xf32>
    %c0 = arith.constant 0 : index
    %c0_0 = arith.constant 0 : index
    %1 = vector.load %arg15[%c0, %c0_0] : memref<32x128xf32, #tpu.memory_space<vmem>>, vector<32x128xf32>
    tpu.vector_store %arg15[%c0, %c0_0], %0 {strides = array<i32>} : memref<32x128xf32, #tpu.memory_space<vmem>>, vector<32x128xf32>,
    %c0_1 = arith.constant 0 : index
    %c0_2 = arith.constant 0 : index
    %c0_3 = arith.constant 0 : index
    %2 = vector.load %arg1[%c0_1, %c0_2, %c0_3] : memref<1x16x128xf32, #tpu.memory_space<vmem>>, vector<1x16x128xf32>
    %3 = vector.shape_cast %2 : vector<1x16x128xf32> to vector<16x128xf32>
    %cst_4 = arith.constant 0.000000e+00 : f32
    %4 = vector.broadcast %cst_4 : f32 to vector<16x128xf32>
    %5 = arith.cmpf oge, %3, %4 : vector<16x128xf32>
    %cst_5 = arith.constant 0.00999999977 : f32
    %6 = vector.broadcast %cst_5 : f32 to vector<16x128xf32>
    %7 = arith.mulf %6, %3 : vector<16x128xf32>
    %8 = arith.select %5, %3, %7 : vector<16x128xi1>, vector<16x128xf32>
    %c8 = arith.constant 8 : index
    %c0_6 = arith.constant 0 : index
    %9 = vector.load %arg15[%c8, %c0_6] : memref<32x128xf32, #tpu.memory_space<vmem>>, vector<16x128xf32>
    tpu.vector_store %arg15[%c8, %c0_6], %8 {strides = array<i32>} : memref<32x128xf32, #tpu.memory_space<vmem>>, vector<16x128xf32>,
    %c7 = arith.constant 7 : index
    %c0_7 = arith.constant 0 : index
    %10 = vector.load %arg15[%c7, %c0_7] : memref<32x128xf32, #tpu.memory_space<vmem>>, vector<16x128xf32>
    %c8_8 = arith.constant 8 : index
    %c0_9 = arith.constant 0 : index
    %11 = vector.load %arg15[%c8_8, %c0_9] : memref<32x128xf32, #tpu.memory_space<vmem>>, vector<16x128xf32>
    %c9 = arith.constant 9 : index
    %c0_10 = arith.constant 0 : index
    %12 = vector.load %arg15[%c9, %c0_10] : memref<32x128xf32, #tpu.memory_space<vmem>>, vector<16x128xf32>
    %13 = tpu.concatenate %10, %11, %12 in 1 : vector<16x128xf32>, vector<16x128xf32>, vector<16x128xf32> -> vector<16x384xf32>
    %14 = arith.truncf %13 : vector<16x384xf32> to vector<16x384xbf16>
    %c0_11 = arith.constant 0 : index
    %c0_12 = arith.constant 0 : index
    %15 = vector.load %arg2[%c0_11, %c0_12] : memref<384x128xbf16, #tpu.memory_space<vmem>>, vector<384x128xbf16>
    %cst_13 = arith.constant dense<0.000000e+00> : vector<16x128xf32>
    %16 = tpu.matmul %14, %15, %cst_13 {dimension_numbers = #tpu.dot_dimension_numbers<[1], [0], [0], [1], [0, 0, 1, 1], [], []>} : vector<16x384xbf16>, vector<384x128xbf16>, vector<16x128xf32> -> vector<16x128xf32>
    %c0_14 = arith.constant 0 : index
    %c0_15 = arith.constant 0 : index
    %17 = vector.load %arg3[%c0_14, %c0_15] : memref<1x128xf32, #tpu.memory_space<vmem>>, vector<1x128xf32>
    %18 = vector.broadcast %17 : vector<1x128xf32> to vector<16x128xf32>
    %19 = arith.addf %16, %18 : vector<16x128xf32>
    %cst_16 = arith.constant 0.000000e+00 : f32
    %20 = vector.broadcast %cst_16 : f32 to vector<16x128xf32>
    %21 = arith.cmpf oge, %19, %20 : vector<16x128xf32>
    %cst_17 = arith.constant 0.00999999977 : f32
    %22 = vector.broadcast %cst_17 : f32 to vector<16x128xf32>
    %23 = arith.mulf %22, %19 : vector<16x128xf32>
    %24 = arith.select %21, %19, %23 : vector<16x128xi1>, vector<16x128xf32>
    %c8_18 = arith.constant 8 : index
    %c0_19 = arith.constant 0 : index
    %25 = vector.load %arg15[%c8_18, %c0_19] : memref<32x128xf32, #tpu.memory_space<vmem>>, vector<16x128xf32>
    tpu.vector_store %arg15[%c8_18, %c0_19], %24 {strides = array<i32>} : memref<32x128xf32, #tpu.memory_space<vmem>>, vector<16x128xf32>,
    %c6 = arith.constant 6 : index
    %c0_20 = arith.constant 0 : index
    %26 = vector.load %arg15[%c6, %c0_20] : memref<32x128xf32, #tpu.memory_space<vmem>>, vector<16x128xf32>
    %c8_21 = arith.constant 8 : index
    %c0_22 = arith.constant 0 : index
    %27 = vector.load %arg15[%c8_21, %c0_22] : memref<32x128xf32, #tpu.memory_space<vmem>>, vector<16x128xf32>
    %c10 = arith.constant 10 : index
    %c0_23 = arith.constant 0 : index
    %28 = vector.load %arg15[%c10, %c0_23] : memref<32x128xf32, #tpu.memory_space<vmem>>, vector<16x128xf32>
    %29 = tpu.concatenate %26, %27, %28 in 1 : vector<16x128xf32>, vector<16x128xf32>, vector<16x128xf32> -> vector<16x384xf32>
    %30 = arith.truncf %29 : vector<16x384xf32> to vector<16x384xbf16>
    %c0_24 = arith.constant 0 : index
    %c0_25 = arith.constant 0 : index
    %31 = vector.load %arg4[%c0_24, %c0_25] : memref<384x128xbf16, #tpu.memory_space<vmem>>, vector<384x128xbf16>
    %cst_26 = arith.constant dense<0.000000e+00> : vector<16x128xf32>
    %32 = tpu.matmul %30, %31, %cst_26 {dimension_numbers = #tpu.dot_dimension_numbers<[1], [0], [0], [1], [0, 0, 1, 1], [], []>} : vector<16x384xbf16>, vector<384x128xbf16>, vector<16x128xf32> -> vector<16x128xf32>
    %c0_27 = arith.constant 0 : index
    %c0_28 = arith.constant 0 : index
    %33 = vector.load %arg5[%c0_27, %c0_28] : memref<1x128xf32, #tpu.memory_space<vmem>>, vector<1x128xf32>
    %34 = vector.broadcast %33 : vector<1x128xf32> to vector<16x128xf32>
    %35 = arith.addf %32, %34 : vector<16x128xf32>
    %36 = arith.addf %35, %3 : vector<16x128xf32>
    %cst_29 = arith.constant 0.000000e+00 : f32
    %37 = vector.broadcast %cst_29 : f32 to vector<16x128xf32>
    %38 = arith.cmpf oge, %36, %37 : vector<16x128xf32>
    %cst_30 = arith.constant 0.00999999977 : f32
    %39 = vector.broadcast %cst_30 : f32 to vector<16x128xf32>
    %40 = arith.mulf %39, %36 : vector<16x128xf32>
    %41 = arith.select %38, %36, %40 : vector<16x128xi1>, vector<16x128xf32>
    %c8_31 = arith.constant 8 : index
    %c0_32 = arith.constant 0 : index
    %42 = vector.load %arg15[%c8_31, %c0_32] : memref<32x128xf32, #tpu.memory_space<vmem>>, vector<16x128xf32>
    tpu.vector_store %arg15[%c8_31, %c0_32], %41 {strides = array<i32>} : memref<32x128xf32, #tpu.memory_space<vmem>>, vector<16x128xf32>,
    %cst_33 = arith.constant 0.000000e+00 : f32
    %43 = vector.broadcast %cst_33 : f32 to vector<16x128xf32>
    %44 = arith.cmpf oge, %3, %43 : vector<16x128xf32>
    %cst_34 = arith.constant 0.00999999977 : f32
    %45 = vector.broadcast %cst_34 : f32 to vector<16x128xf32>
    %46 = arith.mulf %45, %3 : vector<16x128xf32>
    %47 = arith.select %44, %3, %46 : vector<16x128xi1>, vector<16x128xf32>
    %c8_35 = arith.constant 8 : index
    %c0_36 = arith.constant 0 : index
    %48 = vector.load %arg15[%c8_35, %c0_36] : memref<32x128xf32, #tpu.memory_space<vmem>>, vector<16x128xf32>
    tpu.vector_store %arg15[%c8_35, %c0_36], %47 {strides = array<i32>} : memref<32x128xf32, #tpu.memory_space<vmem>>, vector<16x128xf32>,
    %c6_37 = arith.constant 6 : index
    %c0_38 = arith.constant 0 : index
    %49 = vector.load %arg15[%c6_37, %c0_38] : memref<32x128xf32, #tpu.memory_space<vmem>>, vector<16x128xf32>
    %c7_39 = arith.constant 7 : index
    %c0_40 = arith.constant 0 : index
    %50 = vector.load %arg15[%c7_39, %c0_40] : memref<32x128xf32, #tpu.memory_space<vmem>>, vector<16x128xf32>
    %c8_41 = arith.constant 8 : index
    %c0_42 = arith.constant 0 : index
    %51 = vector.load %arg15[%c8_41, %c0_42] : memref<32x128xf32, #tpu.memory_space<vmem>>, vector<16x128xf32>
    %c9_43 = arith.constant 9 : index
    %c0_44 = arith.constant 0 : index
    %52 = vector.load %arg15[%c9_43, %c0_44] : memref<32x128xf32, #tpu.memory_space<vmem>>, vector<16x128xf32>
    %c10_45 = arith.constant 10 : index
    %c0_46 = arith.constant 0 : index
    %53 = vector.load %arg15[%c10_45, %c0_46] : memref<32x128xf32, #tpu.memory_space<vmem>>, vector<16x128xf32>
    %54 = tpu.concatenate %49, %50, %51, %52, %53 in 1 : vector<16x128xf32>, vector<16x128xf32>, vector<16x128xf32>, vector<16x128xf32>, vector<16x128xf32> -> vector<16x640xf32>
    %55 = arith.truncf %54 : vector<16x640xf32> to vector<16x640xbf16>
    %c0_47 = arith.constant 0 : index
    %c0_48 = arith.constant 0 : index
    %56 = vector.load %arg8[%c0_47, %c0_48] : memref<640x128xbf16, #tpu.memory_space<vmem>>, vector<640x128xbf16>
    %cst_49 = arith.constant dense<0.000000e+00> : vector<16x128xf32>
    %57 = tpu.matmul %55, %56, %cst_49 {dimension_numbers = #tpu.dot_dimension_numbers<[1], [0], [0], [1], [0, 0, 1, 1], [], []>} : vector<16x640xbf16>, vector<640x128xbf16>, vector<16x128xf32> -> vector<16x128xf32>
    %c0_50 = arith.constant 0 : index
    %c0_51 = arith.constant 0 : index
    %58 = vector.load %arg9[%c0_50, %c0_51] : memref<1x128xf32, #tpu.memory_space<vmem>>, vector<1x128xf32>
    %59 = vector.broadcast %58 : vector<1x128xf32> to vector<16x128xf32>
    %60 = arith.addf %57, %59 : vector<16x128xf32>
    %61 = arith.addf %60, %3 : vector<16x128xf32>
    %cst_52 = arith.constant 0.000000e+00 : f32
    %62 = vector.broadcast %cst_52 : f32 to vector<16x128xf32>
    %63 = arith.cmpf oge, %61, %62 : vector<16x128xf32>
    %cst_53 = arith.constant 0.00999999977 : f32
    %64 = vector.broadcast %cst_53 : f32 to vector<16x128xf32>
    %65 = arith.mulf %64, %61 : vector<16x128xf32>
    %66 = arith.select %63, %61, %65 : vector<16x128xi1>, vector<16x128xf32>
    %c8_54 = arith.constant 8 : index
    %c0_55 = arith.constant 0 : index
    %67 = vector.load %arg15[%c8_54, %c0_55] : memref<32x128xf32, #tpu.memory_space<vmem>>, vector<16x128xf32>
    tpu.vector_store %arg15[%c8_54, %c0_55], %66 {strides = array<i32>} : memref<32x128xf32, #tpu.memory_space<vmem>>, vector<16x128xf32>,
    %c4 = arith.constant 4 : index
    %c0_56 = arith.constant 0 : index
    %68 = vector.load %arg15[%c4, %c0_56] : memref<32x128xf32, #tpu.memory_space<vmem>>, vector<16x128xf32>
    %c6_57 = arith.constant 6 : index
    %c0_58 = arith.constant 0 : index
    %69 = vector.load %arg15[%c6_57, %c0_58] : memref<32x128xf32, #tpu.memory_space<vmem>>, vector<16x128xf32>
    %c8_59 = arith.constant 8 : index
    %c0_60 = arith.constant 0 : index
    %70 = vector.load %arg15[%c8_59, %c0_60] : memref<32x128xf32, #tpu.memory_space<vmem>>, vector<16x128xf32>
    %c10_61 = arith.constant 10 : index
    %c0_62 = arith.constant 0 : index
    %71 = vector.load %arg15[%c10_61, %c0_62] : memref<32x128xf32, #tpu.memory_space<vmem>>, vector<16x128xf32>
    %c12 = arith.constant 12 : index
    %c0_63 = arith.constant 0 : index
    %72 = vector.load %arg15[%c12, %c0_63] : memref<32x128xf32, #tpu.memory_space<vmem>>, vector<16x128xf32>
    %73 = tpu.concatenate %68, %69, %70, %71, %72 in 1 : vector<16x128xf32>, vector<16x128xf32>, vector<16x128xf32>, vector<16x128xf32>, vector<16x128xf32> -> vector<16x640xf32>
    %74 = arith.truncf %73 : vector<16x640xf32> to vector<16x640xbf16>
    %c0_64 = arith.constant 0 : index
    %c0_65 = arith.constant 0 : index
    %75 = vector.load %arg10[%c0_64, %c0_65] : memref<640x128xbf16, #tpu.memory_space<vmem>>, vector<640x128xbf16>
    %cst_66 = arith.constant dense<0.000000e+00> : vector<16x128xf32>
    %76 = tpu.matmul %74, %75, %cst_66 {dimension_numbers = #tpu.dot_dimension_numbers<[1], [0], [0], [1], [0, 0, 1, 1], [], []>} : vector<16x640xbf16>, vector<640x128xbf16>, vector<16x128xf32> -> vector<16x128xf32>
    %c0_67 = arith.constant 0 : index
    %c0_68 = arith.constant 0 : index
    %77 = vector.load %arg11[%c0_67, %c0_68] : memref<1x128xf32, #tpu.memory_space<vmem>>, vector<1x128xf32>
    %78 = vector.broadcast %77 : vector<1x128xf32> to vector<16x128xf32>
    %79 = arith.addf %76, %78 : vector<16x128xf32>
    %cst_69 = arith.constant 0.000000e+00 : f32
    %80 = vector.broadcast %cst_69 : f32 to vector<16x128xf32>
    %81 = arith.cmpf oge, %79, %80 : vector<16x128xf32>
    %cst_70 = arith.constant 0.00999999977 : f32
    %82 = vector.broadcast %cst_70 : f32 to vector<16x128xf32>
    %83 = arith.mulf %82, %79 : vector<16x128xf32>
    %84 = arith.select %81, %79, %83 : vector<16x128xi1>, vector<16x128xf32>
    %c8_71 = arith.constant 8 : index
    %c0_72 = arith.constant 0 : index
    %85 = vector.load %arg15[%c8_71, %c0_72] : memref<32x128xf32, #tpu.memory_space<vmem>>, vector<16x128xf32>
    tpu.vector_store %arg15[%c8_71, %c0_72], %84 {strides = array<i32>} : memref<32x128xf32, #tpu.memory_space<vmem>>, vector<16x128xf32>,
    %c0_73 = arith.constant 0 : index
    %c0_74 = arith.constant 0 : index
    %86 = vector.load %arg15[%c0_73, %c0_74] : memref<32x128xf32, #tpu.memory_space<vmem>>, vector<16x128xf32>
    %c4_75 = arith.constant 4 : index
    %c0_76 = arith.constant 0 : index
    %87 = vector.load %arg15[%c4_75, %c0_76] : memref<32x128xf32, #tpu.memory_space<vmem>>, vector<16x128xf32>
    %c8_77 = arith.constant 8 : index
    %c0_78 = arith.constant 0 : index
    %88 = vector.load %arg15[%c8_77, %c0_78] : memref<32x128xf32, #tpu.memory_space<vmem>>, vector<16x128xf32>
    %c12_79 = arith.constant 12 : index
    %c0_80 = arith.constant 0 : index
    %89 = vector.load %arg15[%c12_79, %c0_80] : memref<32x128xf32, #tpu.memory_space<vmem>>, vector<16x128xf32>
    %c16 = arith.constant 16 : index
    %c0_81 = arith.constant 0 : index
    %90 = vector.load %arg15[%c16, %c0_81] : memref<32x128xf32, #tpu.memory_space<vmem>>, vector<16x128xf32>
    %91 = tpu.concatenate %86, %87, %88, %89, %90 in 1 : vector<16x128xf32>, vector<16x128xf32>, vector<16x128xf32>, vector<16x128xf32>, vector<16x128xf32> -> vector<16x640xf32>
    %92 = arith.truncf %91 : vector<16x640xf32> to vector<16x640xbf16>
    %c0_82 = arith.constant 0 : index
    %c0_83 = arith.constant 0 : index
    %93 = vector.load %arg12[%c0_82, %c0_83] : memref<640x128xbf16, #tpu.memory_space<vmem>>, vector<640x128xbf16>
    %cst_84 = arith.constant dense<0.000000e+00> : vector<16x128xf32>
    %94 = tpu.matmul %92, %93, %cst_84 {dimension_numbers = #tpu.dot_dimension_numbers<[1], [0], [0], [1], [0, 0, 1, 1], [], []>} : vector<16x640xbf16>, vector<640x128xbf16>, vector<16x128xf32> -> vector<16x128xf32>
    %c0_85 = arith.constant 0 : index
    %c0_86 = arith.constant 0 : index
    %95 = vector.load %arg13[%c0_85, %c0_86] : memref<1x128xf32, #tpu.memory_space<vmem>>, vector<1x128xf32>
    %96 = vector.broadcast %95 : vector<1x128xf32> to vector<16x128xf32>
    %97 = arith.addf %94, %96 : vector<16x128xf32>
    %98 = arith.addf %97, %61 : vector<16x128xf32>
    %cst_87 = arith.constant 5.000000e-01 : f32
    %99 = vector.broadcast %cst_87 : f32 to vector<16x128xf32>
    %100 = arith.mulf %98, %99 : vector<16x128xf32>
    %c0_88 = arith.constant 0 : index
    %c0_89 = arith.constant 0 : index
    %c0_90 = arith.constant 0 : index
    %101 = vector.load %arg14[%c0_88, %c0_89, %c0_90] : memref<1x16x128xf32, #tpu.memory_space<vmem>>, vector<1x16x128xf32>
    %102 = vector.shape_cast %101 : vector<1x16x128xf32> to vector<16x128xf32>
    %103 = vector.shape_cast %100 : vector<16x128xf32> to vector<1x16x128xf32>
    tpu.vector_store %arg14[%c0_88, %c0_89, %c0_90], %103 {strides = array<i32>} : memref<1x16x128xf32, #tpu.memory_space<vmem>>, vector<1x16x128xf32>,
    return
  }
  func.func @transform_0(%arg0: i32) -> (i32, i32, i32) {
    %c0_i32 = arith.constant 0 : i32
    %c0_i32_0 = arith.constant 0 : i32
    %c0_i32_1 = arith.constant 0 : i32
    return %arg0, %c0_i32, %c0_i32_0 : i32, i32, i32
  }
  func.func @transform_1(%arg0: i32) -> (i32, i32) {
    %c0_i32 = arith.constant 0 : i32
    %c0_i32_0 = arith.constant 0 : i32
    %c0_i32_1 = arith.constant 0 : i32
    return %c0_i32, %c0_i32_0 : i32, i32
  }
  func.func @transform_2(%arg0: i32) -> (i32, i32) {
    %c0_i32 = arith.constant 0 : i32
    %c0_i32_0 = arith.constant 0 : i32
    %c0_i32_1 = arith.constant 0 : i32
    return %c0_i32, %c0_i32_0 : i32, i32
  }
  func.func @transform_3(%arg0: i32) -> (i32, i32) {
    %c0_i32 = arith.constant 0 : i32
    %c0_i32_0 = arith.constant 0 : i32
    %c0_i32_1 = arith.constant 0 : i32
    return %c0_i32, %c0_i32_0 : i32, i32
  }
  func.func @transform_4(%arg0: i32) -> (i32, i32) {
    %c0_i32 = arith.constant 0 : i32
    %c0_i32_0 = arith.constant 0 : i32
    %c0_i32_1 = arith.constant 0 : i32
    return %c0_i32, %c0_i32_0 : i32, i32
  }
  func.func @transform_5(%arg0: i32) -> (i32, i32) {
    %c0_i32 = arith.constant 0 : i32
    %c0_i32_0 = arith.constant 0 : i32
    %c0_i32_1 = arith.constant 0 : i32
    return %c0_i32, %c0_i32_0 : i32, i32
  }
  func.func @transform_6(%arg0: i32) -> (i32, i32) {
    %c0_i32 = arith.constant 0 : i32
    %c0_i32_0 = arith.constant 0 : i32
    %c0_i32_1 = arith.constant 0 : i32
    return %c0_i32, %c0_i32_0 : i32, i32
  }
  func.func @transform_7(%arg0: i32) -> (i32, i32) {
    %c0_i32 = arith.constant 0 : i32
    %c0_i32_0 = arith.constant 0 : i32
    %c0_i32_1 = arith.constant 0 : i32
    return %c0_i32, %c0_i32_0 : i32, i32
  }
  func.func @transform_8(%arg0: i32) -> (i32, i32) {
    %c0_i32 = arith.constant 0 : i32
    %c0_i32_0 = arith.constant 0 : i32
    %c0_i32_1 = arith.constant 0 : i32
    return %c0_i32, %c0_i32_0 : i32, i32
  }
  func.func @transform_9(%arg0: i32) -> (i32, i32) {
    %c0_i32 = arith.constant 0 : i32
    %c0_i32_0 = arith.constant 0 : i32
    %c0_i32_1 = arith.constant 0 : i32
    return %c0_i32, %c0_i32_0 : i32, i32
  }
  func.func @transform_10(%arg0: i32) -> (i32, i32) {
    %c0_i32 = arith.constant 0 : i32
    %c0_i32_0 = arith.constant 0 : i32
    %c0_i32_1 = arith.constant 0 : i32
    return %c0_i32, %c0_i32_0 : i32, i32
  }
  func.func @transform_11(%arg0: i32) -> (i32, i32) {
    %c0_i32 = arith.constant 0 : i32
    %c0_i32_0 = arith.constant 0 : i32
    %c0_i32_1 = arith.constant 0 : i32
    return %c0_i32, %c0_i32_0 : i32, i32
  }
  func.func @transform_12(%arg0: i32) -> (i32, i32) {
    %c0_i32 = arith.constant 0 : i32
    %c0_i32_0 = arith.constant 0 : i32
    %c0_i32_1 = arith.constant 0 : i32
    return %c0_i32, %c0_i32_0 : i32, i32
  }
  func.func @transform_13(%arg0: i32) -> (i32, i32, i32) {
    %c0_i32 = arith.constant 0 : i32
    %c0_i32_0 = arith.constant 0 : i32
    %c0_i32_1 = arith.constant 0 : i32
    return %arg0, %c0_i32, %c0_i32_0 : i32, i32, i32
  }
}

</mosaic_0001>

<bundles_post_ra>
// kernel: tpu_custom_call.1
= control target key start
LH: loop header
LB: loop body
LE: loop exit
PB: predicated region body
PF: predicated region fallthrough
CT: control target
= control target key end

     0   :  { %s4097_s0 = inlined_call_operand.hbm [shape: f32[2,16,128], index: 0, kind: input, shape index: {}]   ;;  %s4098_s1 = inlined_call_operand.hbm [shape: bf16[384,128], index: 1, kind: input, shape index: {}]   ;;  %s4099_s2 = inlined_call_operand.vmem [shape: f32[1,128], index: 2, kind: input, shape index: {}]   ;;  %s4100_s3 = inlined_call_operand.hbm [shape: bf16[384,128], index: 3, kind: input, shape index: {}]   ;;  %s4101_s4 = inlined_call_operand.vmem [shape: f32[1,128], index: 4, kind: input, shape index: {}]   ;;  %s4102_s5 = inlined_call_operand.hbm [shape: bf16[384,128], index: 5, kind: input, shape index: {}]   ;;  %s4103_s6 = inlined_call_operand.vmem [shape: f32[1,128], index: 6, kind: input, shape index: {}]   ;;  %s4104_s7 = inlined_call_operand.hbm [shape: bf16[640,128], index: 7, kind: input, shape index: {}]   ;;  %s4105_s8 = inlined_call_operand.vmem [shape: f32[1,128], index: 8, kind: input, shape index: {}]   ;;  %s4106_s9 = inlined_call_operand.hbm [shape: bf16[640,128], index: 9, kind: input, shape index: {}]   ;;  %s4107_s10 = inlined_call_operand.vmem [shape: f32[1,128], index: 10, kind: input, shape index: {}]   ;;  %s4108_s11 = inlined_call_operand.hbm [shape: bf16[640,128], index: 11, kind: input, shape index: {}]   ;;  %s4109_s12 = inlined_call_operand.vmem [shape: f32[1,128], index: 12, kind: input, shape index: {}]   ;;  %s4110_s13 = inlined_call_operand.hbm [shape: f32[2,16,128], index: 13, kind: output, shape index: {}]  }
   0x1   :  { %4111 = sst [smem:[#allocation21_spill]] %s4098_s1 }
   0x2   :  { %4112 = sst [smem:[#allocation22_spill]] %s4100_s3 }
   0x3   :  { %4113 = sst [smem:[#allocation23_spill]] %s4102_s5 }
   0x4   :  { %4114 = sst [smem:[#allocation24_spill]] %s4104_s7 }
   0x5   :  { %4115 = sst [smem:[#allocation25_spill]] %s4106_s9 }
   0x6   :  { %4116 = sst [smem:[#allocation26_spill]] %s4108_s11 }
   0x7   :  { %18 = vsyncpa [#allocation4], 0 }
   0x8   :  { %20 = vsyncpa [#allocation4 + $0x1], 0 }
   0x9   :  { %21 = vsyncpa [#allocation7], 0 }
   0xa   :  { %22 = vsyncpa [#allocation10], 0 }
   0xb   :  { %23 = vsyncpa [#allocation13], 0 }
   0xc   :  { %24 = vsyncpa [#allocation5], 0 }
   0xd   :  { %26 = vsyncpa [#allocation5 + $0x1], 0  ;;  %s3841_s23 = smov 0   ;;  %s3843_s24 = smov 0  }
   0xe   :  { %s3845_s25 = smov 0   ;;  %s3847_s26 = smov 0  }
   0xf LB: > { %s4117_s1 = sld [smem:[#allocation21_spill]]  ;;  %s3865_s30 = sadd.s32 4294967295, %s3756_s26   ;;  %s3756_s26 = sphi %s3847_s26, %s4134_s26   ;;  %s3752_s25 = sphi %s3845_s25, %s4133_s25   ;;  %s3748_s24 = sphi %s3843_s24, %s4132_s24   ;;  %s3744_s23 = sphi %s3841_s23, %s4131_s23  }
  0x10   : > { %p2483_p0 = scmp.ge.s32.totalorder %s3756_s26, 1  ;;  %p53_p1 = scmp.eq.s32.totalorder %s3865_s30, 0 }
  0x11   : > { %p341_p2 = scmp.lt.s32.totalorder %s3756_s26, 3  ;;  %s3758_s15 = smov [#allocation6]  }
  0x12   : > { %s354_s16 = sshll.u32 %s3758_s15, 4  ;;  %s4119_s5 = sld [smem:[#allocation23_spill]]  ;;  %s355_s16 = int_to_ptr.vmem [resolvable:$true] %s354_s16 }
  0x13   : > { %p3870_p3 = pnand %p2483_p0, %p341_p2  ;;  %s4121_s9 = sld [smem:[#allocation25_spill]] }
  0x14   : > { %s3759_s6 = smov [#allocation9]   ;;  %s3760_s28 = smov 64  }
  0x15   : > { %s352_s29 = sshll.u32 %s4117_s1, 4  ;;  %p3378_p4 = pneg %p3870_p3  ;;  %s353_s29 = int_to_ptr.hbm [resolvable:$true] %s352_s29 }
  0x16   : > { %s388_s27 = sshll.u32 %s3759_s6, 4  ;;  %s3761_s15 = smov 4   ;;  %s389_s27 = int_to_ptr.vmem [resolvable:$true] %s388_s27 }
  0x17   : > { %p3882_p6 = pnand %p3378_p4, %p53_p1  ;;  %s4122_s3 = sld [smem:[#allocation22_spill]] }
  0x18   : > { %s386_s19 = sshll.u32 %s4119_s5, 4  ;;  %s3762_s21 = smov [#allocation12]   ;;  %s387_s19 = int_to_ptr.hbm [resolvable:$true] %s386_s19 }
  0x19   : > { %s420_s22 = sshll.u32 %s4121_s9, 4  ;;  %s422_s6 = sshll.u32 %s3762_s21, 4  ;;  %s421_s22 = int_to_ptr.hbm [resolvable:$true] %s420_s22  ;;  %s423_s6 = int_to_ptr.vmem [resolvable:$true] %s422_s6 }
  0x1a   : > { %3381 = dma.hbm_to_vmem [thread:$0]  (!%p3882_p6), %s353_s29, 3072, %s355_s16, [#allocation7], %s3760_s28, %s3760_s28, %s3761_s15  }
  0x1b   : > { %3387 = dma.hbm_to_vmem [thread:$0]  (!%p3882_p6), %s387_s19, 3072, %s389_s27, [#allocation10], %s3760_s28, %s3760_s28, %s3761_s15  }
  0x1c   : > { %3393 = dma.hbm_to_vmem [thread:$0]  (!%p3882_p6), %s421_s22, 5120, %s423_s6, [#allocation13], %s3760_s28, %s3760_s28, %s3761_s15  }
  0x1d   : > { %s369_s20 = sshll.u32 %s4122_s3, 4  ;;  %s3763_s29 = smov [#allocation8]   ;;  %s370_s20 = int_to_ptr.hbm [resolvable:$true] %s369_s20 }
  0x1e   : > { %s371_s16 = sshll.u32 %s3763_s29, 4  ;;  %s4123_s7 = sld [smem:[#allocation24_spill]]  ;;  %s372_s16 = int_to_ptr.vmem [resolvable:$true] %s371_s16 }
  0x1f   : > { %3384 = dma.hbm_to_vmem [thread:$0]  (!%p3882_p6), %s370_s20, 3072, %s372_s16, [#allocation7], %s3760_s28, %s3760_s28, %s3761_s15  }
  0x20   : > { %s4124_s11 = sld [smem:[#allocation26_spill]]  ;;  %s3764_s21 = smov [#allocation11]  }
  0x21   : > { %s405_s1 = sshll.u32 %s3764_s21, 4  ;;  %s3765_s20 = smov [#allocation14]   ;;  %s406_s1 = int_to_ptr.vmem [resolvable:$true] %s405_s1 }
  0x22   : > { %s439_s6 = sshll.u32 %s3765_s20, 4  ;;  %s2482_s29 = sadd.s32 4294967294, %s3756_s26   ;;  %s440_s6 = int_to_ptr.vmem [resolvable:$true] %s439_s6 }
  0x23   : > { %s3930_s16 = sadd.s32 1, %s3756_s26   ;;  %s39_s17 = sadd.s32 1, %s3752_s25 }
  0x24   : > { %s403_s27 = sshll.u32 %s4123_s7, 4  ;;  %s36_s19 = ssub.s32 %s3756_s26, %s3930_s16  ;;  %s404_s27 = int_to_ptr.hbm [resolvable:$true] %s403_s27 }
  0x25   : > { %3390 = dma.hbm_to_vmem [thread:$0]  (!%p3882_p6), %s404_s27, 5120, %s406_s1, [#allocation10], %s3760_s28, %s3760_s28, %s3761_s15  }
  0x26   : > { %s437_s18 = sshll.u32 %s4124_s11, 4  ;;  %p37_p7 = scmp.eq.s32.totalorder %s36_s19, 0  ;;  %s438_s18 = int_to_ptr.hbm [resolvable:$true] %s437_s18 }
  0x27   : > { %3396 = dma.hbm_to_vmem [thread:$0]  (!%p3882_p6), %s438_s18, 5120, %s440_s6, [#allocation13], %s3760_s28, %s3760_s28, %s3761_s15  }
  0x28   : > { %p46_p8 = scmp.ne.s32.totalorder %s3752_s25, %s3748_s24  ;;  %p47_p9 = scmp.eq.s32.totalorder %s3756_s26, 0 }
  0x29   : > { %p52_p10 = scmp.ne.s32.totalorder %s3748_s24, %s3744_s23  ;;  %p328_p13 = scmp.eq.s32.totalorder %s3865_s30, 1 }
  0x2a   : > { %s3941_s27 = scalar_select %p37_p7, %s3752_s25, %s39_s17  }
  0x2b   : > { %p3943_p11 = por %p47_p9, %p46_p8  ;;  %p3949_p12 = por %p53_p1, %p52_p10 }
  0x2c   : > { %p334_p0 = scmp.eq.s32.totalorder %s2482_s29, 1  ;;  %p3411_p2 = scmp.lt.s32.totalorder %s3756_s26, 2 }
  0x2d   : > { %s456_s15 = sand.u32 1, %s3752_s25   ;;  %p3956_p4 = por %p328_p13, %p46_p8 }
  0x2e   : > { %p3960_p6 = por %p334_p0, %p52_p10  ;;  %s2491_s21 = sshll.u32 %s456_s15, 4 }
  0x2f   : > { %s3180_s1 = sshll.u32 %s3756_s26, 4  ;;  %s460_s17 = scalar_lea.vmem [#allocation3], %s2491_s21 }
  0x30   : > { %s465_s19 = scalar_lea.hbm %s4097_s0, %s3180_s1  ;;  %s468_s3 = sshll.u32 %s460_s17, 4  ;;  %s469_s3 = int_to_ptr.vmem [resolvable:$true] %s468_s3 }
  0x31   : > { %s466_s5 = sshll.u32 %s465_s19, 4  ;;  %p3970_p7 = pnand %p3411_p2, %p3943_p11  ;;  %s467_s5 = int_to_ptr.hbm [resolvable:$true] %s466_s5 }
  0x32   : > { %s457_s7 = scalar_lea.sflag [#allocation4], %s456_s15  ;;  %s3648_s9 = sshra.s32 %s467_s5, 4  ;;  %s3649_s9 = int_to_ptr.hbm [resolvable:$true] %s3648_s9 }
  0x33   : > { %s3650_s11 = scalar_lea.hbm %s3649_s9, 16  ;;  %p3652_p9 = pneg %p3970_p7 }
  0x34   : > { %p3651_p8 = scmp.ne.s32.totalorder %s3649_s9, %s3650_s11  ;;  %s3655_s20 = scalar_lea.hbm %s4097_s0, 32 }
  0x35   : > { %p3656_p11 = scmp.lt.s32.totalorder %s3649_s9, %s4097_s0  ;;  %p3657_p0 = scmp.lt.s32.totalorder %s3655_s20, %s3650_s11 }
  0x36   : > { %p3653_p10 = pnand %p3652_p9, %p3651_p8 }
  0x37   : > { %p3658_p2 = por %p3657_p0, %p3656_p11 }
  0x38   : > { %p3654_p13 = pneg %p3653_p10 }
  0x3a   : > { %p3659_p5 = pnand %p3658_p2, %p3654_p13 }
  0x3c   : > { %3662 = shalt.err (!%p3659_p5)
}
  0x3d   : > { %s3766_s15 = smov 128   ;;  %s3767_s19 = smov 8  }
  0x3e   : > { %3400 = dma.hbm_to_vmem [thread:$0]  (!%p3970_p7), %s467_s5, 256, %s469_s3, %s457_s7, %s3766_s15, %s3766_s15, %s3767_s19  }
  0x3f   : > { %480 = sbr.rel (%p3870_p3) target bundleno = 770 (0x302), region = 72  ;;  %s3987_s17 = sand.u32 (!%p3870_p3), 1, %s3748_s24  }
  0x40   : > { %s2495_s9 = sshll.u32 (!%p3870_p3), %s3987_s17, 4  ;;  %s483_s11 = scalar_lea.sflag (!%p3870_p3), [#allocation4], %s3987_s17 }
  0x41   : > { %s486_s21 = scalar_lea.vmem (!%p3870_p3), [#allocation3], %s2495_s9 }
  0x44   : > { %3723 = dma.done.wait (%p3949_p12), %s483_s11, 256  }
  0x45   : > { %3725 = vsyncadd (%p3949_p12), %s483_s11, 4294967040 }
  0x46   : > { %3727 = dma.done.wait (%p53_p1), [#allocation7], 6144  }
  0x47   : > { %3729 = vsyncadd (%p53_p1), [#allocation7], 4294961152 }
  0x48   : > { %3731 = dma.done.wait (%p53_p1), [#allocation10], 8192  }
  0x49   : > { %3733 = vsyncadd (%p53_p1), [#allocation10], 4294959104 }
  0x4a   : > { %3735 = dma.done.wait (%p53_p1), [#allocation13], 10240  }
  0x4b   : > { %3737 = vsyncadd (%p53_p1), [#allocation13], 4294957056  ;;  %v3768_v0 = vmov 0.0   ;;  %v3188_v1 = vld [vmem:[#allocation6 + $0x38] sm:$0xff]  ;;  %v3187_v4 = vld [vmem:[#allocation6 + $0x30] sm:$0xff]  ;;  %s3349_s6 = sshll.u32 %s3865_s30, 4 }
  0x4c   : > { %560 = vst [vmem:[#allocation2] sm:$0xff] %v3768_v0  ;;  %v3196_v2 = vld [vmem:[#allocation6 + $0x78] sm:$0xff]  ;;  %779 = vmatpush.bf16.msra.mxu0 %v3188_v1  ;;  %v3195_v5 = vld [vmem:[#allocation6 + $0x70] sm:$0xff]  ;;  %v3186_v7 = vld [vmem:[#allocation6 + $0x28] sm:$0xff]  ;;  %s2348_s19 = scalar_lea.hbm %s4110_s13, %s3349_s6  ;;  %s559_s11 = scalar_lea.vmem [#allocation15], %s2495_s9 }
  0x4d   : > { %563 = vst [vmem:[#allocation2 + $0x18] sm:$0xff] %v3768_v0  ;;  %v3204_v3 = vld [vmem:[#allocation6 + $0xb8] sm:$0xff]  ;;  %793 = vmatpush.bf16.msra.mxu1 %v3196_v2  ;;  %v3203_v6 = vld [vmem:[#allocation6 + $0xb0] sm:$0xff]  ;;  %v3194_v8 = vld [vmem:[#allocation6 + $0x68] sm:$0xff]  ;;  %s2351_s3 = sshll.u32 %s2348_s19, 4  ;;  %s2337_s30 = scalar_lea.sflag [#allocation5], %s3987_s17  ;;  %s2352_s3 = int_to_ptr.hbm [resolvable:$true] %s2351_s3 }
  0x4e   : > { %807 = vmatpush.bf16.msra.mxu2 %v3204_v3  ;;  %v3202_v9 = vld [vmem:[#allocation6 + $0xa8] sm:$0xff]  ;;  %v4011_v10 = vld [vmem:[%s486_s21] sm:$0xff]  ;;  %v3212_v12 = vld [vmem:[#allocation8 + $0x38] sm:$0xff]  ;;  %s3692_s5 = sshra.s32 %s2352_s3, 4  ;;  %s3698_s28 = scalar_lea.hbm %s4110_s13, 32  ;;  %s3693_s5 = int_to_ptr.hbm [resolvable:$true] %s3692_s5 }
  0x4f   : > { %v4013_v11 = vld [vmem:[%s486_s21 + $0x8] sm:$0xff]  ;;  %vm566_vm0 = vcmp.ge.f32.partialorder %v4011_v10, 0.0  ;;  %v568_v13 = vmul.f32 0.01, %v4011_v10  ;;  %v3185_v15 = vld [vmem:[#allocation6 + $0x20] sm:$0xff]  ;;  %1034 = vmatpush.bf16.msra.mxu3 %v3212_v12  ;;  %v3183_v23 = vld [vmem:[#allocation6 + $0x10] sm:$0xff]  ;;  %p3699_p12 = scmp.lt.s32.totalorder %s3693_s5, %s4110_s13 }
  0x50   : > { %780 = vmatpush.bf16.msra.mxu0 %v3187_v4  ;;  %vm567_vm1 = vcmp.ge.f32.partialorder %v4013_v11, 0.0  ;;  %v569_v14 = vmul.f32 0.01, %v4013_v11  ;;  %v3193_v16 = vld [vmem:[#allocation6 + $0x60] sm:$0xff]  ;;  %v3184_v20 = vld [vmem:[#allocation6 + $0x18] sm:$0xff]  ;;  %v3191_v24 = vld [vmem:[#allocation6 + $0x50] sm:$0xff] }
  0x51   : > { %794 = vmatpush.bf16.msra.mxu1 %v3195_v5  ;;  %v3201_v17 = vld [vmem:[#allocation6 + $0xa0] sm:$0xff]  ;;  %v4020_v18 = vsel %vm566_vm0, %v4011_v10, %v568_v13  ;;  %v3192_v21 = vld [vmem:[#allocation6 + $0x58] sm:$0xff]  ;;  %v3199_v25 = vld [vmem:[#allocation6 + $0x90] sm:$0xff]  ;;  %s2349_s21 = sshll.u32 %s559_s11, 4  ;;  %s3694_s7 = scalar_lea.hbm %s3693_s5, 16  ;;  %s2350_s21 = int_to_ptr.vmem [resolvable:$true] %s2349_s21 }
  0x52   : > { %808 = vmatpush.bf16.msra.mxu2 %v3203_v6  ;;  %v4023_v19 = vsel %vm567_vm1, %v4013_v11, %v569_v14  ;;  %572 = vst [vmem:[#allocation2 + $0x8] sm:$0xff] %v4020_v18  ;;  %v3200_v22 = vld [vmem:[#allocation6 + $0x98] sm:$0xff]  ;;  %v3182_v26 = vld [vmem:[#allocation6 + $0x8] sm:$0xff]  ;;  %v3181_v29 = vld [vmem:[#allocation6] sm:$0xff]  ;;  %p3695_p1 = scmp.ne.s32.totalorder %s3693_s5, %s3694_s7  ;;  %p3700_p7 = scmp.lt.s32.totalorder %s3698_s28, %s3694_s7 }
  0x53   : > { %573 = vst [vmem:[#allocation2 + $0x10] sm:$0xff] %v4023_v19  ;;  %v3190_v27 = vld [vmem:[#allocation6 + $0x48] sm:$0xff]  ;;  %v3189_v30 = vld [vmem:[#allocation6 + $0x40] sm:$0xff]  ;;  %v3220_v36 = vld [vmem:[#allocation8 + $0x78] sm:$0xff]  ;;  %v4029_v39 = vpack.c.bf16 %v4023_v19, %v4020_v18 }
  0x54   : > { %781 = vmatpush.bf16.msra.mxu0 %v3186_v7  ;;  %v3198_v28 = vld [vmem:[#allocation6 + $0x88] sm:$0xff]  ;;  %v3197_v31 = vld [vmem:[#allocation6 + $0x80] sm:$0xff]  ;;  %v3228_v37 = vld [vmem:[#allocation8 + $0xb8] sm:$0xff]  ;;  %p3696_p3 = pnand %p3695_p1, %p3956_p4  ;;  %p3701_p8 = por %p3700_p7, %p3699_p12 }
  0x55   : > { %795 = vmatpush.bf16.msra.mxu1 %v3194_v8  ;;  %v3211_v41 = vld [vmem:[#allocation8 + $0x30] sm:$0xff]  ;;  %v3210_v44 = vld [vmem:[#allocation8 + $0x28] sm:$0xff]  ;;  %v3236_v45 = vld [vmem:[#allocation11 + $0x38] sm:$0xff] }
  0x56   : > { %809 = vmatpush.bf16.msra.mxu2 %v3202_v9  ;;  %1035 = vmatpush.bf16.msra.mxu3 %v3211_v41  ;;  %v3219_v42 = vld [vmem:[#allocation8 + $0x70] sm:$0xff]  ;;  %v3218_v46 = vld [vmem:[#allocation8 + $0x68] sm:$0xff]  ;;  %v3209_v48 = vld [vmem:[#allocation8 + $0x20] sm:$0xff]  ;;  %p3697_p5 = pneg %p3696_p3 }
  0x57   : > { %v3227_v43 = vld [vmem:[#allocation8 + $0xb0] sm:$0xff]  ;;  %v3226_v47 = vld [vmem:[#allocation8 + $0xa8] sm:$0xff]  ;;  %v3217_v50 = vld [vmem:[#allocation8 + $0x60] sm:$0xff] }
  0x58   : > { %782 = vmatpush.bf16.msra.mxu0 %v3185_v15  ;;  %v3235_v49 = vld [vmem:[#allocation11 + $0x30] sm:$0xff]  ;;  %v3225_v51 = vld [vmem:[#allocation8 + $0xa0] sm:$0xff]  ;;  %v3208_v52 = vld [vmem:[#allocation8 + $0x18] sm:$0xff]  ;;  %p3702_p9 = pnand %p3701_p8, %p3697_p5 }
  0x59   : > { %796 = vmatpush.bf16.msra.mxu1 %v3193_v16  ;;  %v574_v32 = vld [vmem:[#allocation2 + $0x7] sm:$0xff]  ;;  %v3216_v54 = vld [vmem:[#allocation8 + $0x58] sm:$0xff]  ;;  %v3207_v56 = vld [vmem:[#allocation8 + $0x10] sm:$0xff] }
  0x5a   : > { %810 = vmatpush.bf16.msra.mxu2 %v3201_v17  ;;  %v575_v33 = vld [vmem:[#allocation2 + $0xf] sm:$0xff]  ;;  %1036 = vmatpush.bf16.msra.mxu3 %v3210_v44  ;;  %v3224_v55 = vld [vmem:[#allocation8 + $0x98] sm:$0xff]  ;;  %v3233_v57 = vld [vmem:[#allocation11 + $0x20] sm:$0xff] }
  0x5b   : > { %v578_v34 = vld [vmem:[#allocation2 + $0x9] sm:$0xff]  ;;  %v579_v35 = vld [vmem:[#allocation2 + $0x11] sm:$0xff]  ;;  %v580_v38 = vpack.c.bf16 %v575_v33, %v574_v32  ;;  %v3205_v1 = vld [vmem:[#allocation8] sm:$0xff] }
  0x5c   : > { %783 = vmatpush.bf16.msra.mxu0 %v3184_v20  ;;  %v582_v40 = vpack.c.bf16 %v579_v35, %v578_v34  ;;  %v3234_v53 = vld [vmem:[#allocation11 + $0x28] sm:$0xff]  ;;  %v3215_v58 = vld [vmem:[#allocation8 + $0x50] sm:$0xff]  ;;  %v3232_v61 = vld [vmem:[#allocation11 + $0x18] sm:$0xff] }
  0x5d   : > { %797 = vmatpush.bf16.msra.mxu1 %v3192_v21  ;;  %v3223_v59 = vld [vmem:[#allocation8 + $0x90] sm:$0xff]  ;;  %v3206_v60 = vld [vmem:[#allocation8 + $0x8] sm:$0xff]  ;;  %v3244_v3 = vld [vmem:[#allocation11 + $0x78] sm:$0xff] }
  0x5e   : > { %811 = vmatpush.bf16.msra.mxu2 %v3200_v22  ;;  %1037 = vmatpush.bf16.msra.mxu3 %v3209_v48  ;;  %v3214_v62 = vld [vmem:[#allocation8 + $0x48] sm:$0xff]  ;;  %v3231_v2 = vld [vmem:[#allocation11 + $0x10] sm:$0xff]  ;;  %v3213_v4 = vld [vmem:[#allocation8 + $0x40] sm:$0xff] }
  0x5f   : > { %v3222_v63 = vld [vmem:[#allocation8 + $0x88] sm:$0xff]  ;;  %v3221_v5 = vld [vmem:[#allocation8 + $0x80] sm:$0xff]  ;;  %v3252_v6 = vld [vmem:[#allocation11 + $0xb8] sm:$0xff] }
  0x60   : > { %784 = vmatpush.bf16.msra.mxu0 %v3183_v23  ;;  %v3243_v7 = vld [vmem:[#allocation11 + $0x70] sm:$0xff]  ;;  %v3230_v8 = vld [vmem:[#allocation11 + $0x8] sm:$0xff]  ;;  %v3260_v9 = vld [vmem:[#allocation11 + $0xf8] sm:$0xff] }
  0x61   : > { %798 = vmatpush.bf16.msra.mxu1 %v3191_v24  ;;  %v3251_v12 = vld [vmem:[#allocation11 + $0xb0] sm:$0xff]  ;;  %v3229_v13 = vld [vmem:[#allocation11] sm:$0xff]  ;;  %v3242_v14 = vld [vmem:[#allocation11 + $0x68] sm:$0xff] }
  0x62   : > { %812 = vmatpush.bf16.msra.mxu2 %v3199_v25  ;;  %1038 = vmatpush.bf16.msra.mxu3 %v3208_v52  ;;  %v3259_v15 = vld [vmem:[#allocation11 + $0xf0] sm:$0xff]  ;;  %v3268_v16 = vld [vmem:[#allocation11 + $0x138] sm:$0xff]  ;;  %v3250_v17 = vld [vmem:[#allocation11 + $0xa8] sm:$0xff] }
  0x63   : > { %v3241_v20 = vld [vmem:[#allocation11 + $0x60] sm:$0xff]  ;;  %v3258_v21 = vld [vmem:[#allocation11 + $0xe8] sm:$0xff]  ;;  %v3267_v22 = vld [vmem:[#allocation11 + $0x130] sm:$0xff] }
  0x64   : > { %785 = vmatpush.bf16.msra.mxu0 %v3182_v26  ;;  %v3464_v23 = vld [vmem:[%s4099_s2] ss:$0 sm:$0xff]  ;;  %v3240_v25 = vld [vmem:[#allocation11 + $0x58] sm:$0xff]  ;;  %v3239_v32 = vld [vmem:[#allocation11 + $0x50] sm:$0xff] }
  0x65   : > { %799 = vmatpush.bf16.msra.mxu1 %v3190_v27  ;;  %v3249_v24 = vld [vmem:[#allocation11 + $0xa0] sm:$0xff]  ;;  %v3266_v27 = vld [vmem:[#allocation11 + $0x128] sm:$0xff]  ;;  %v3256_v33 = vld [vmem:[#allocation11 + $0xd8] sm:$0xff] }
  0x66   : > { %813 = vmatpush.bf16.msra.mxu2 %v3198_v28  ;;  %1039 = vmatpush.bf16.msra.mxu3 %v3207_v56  ;;  %v3257_v26 = vld [vmem:[#allocation11 + $0xe0] sm:$0xff]  ;;  %v3264_v41 = vld [vmem:[#allocation11 + $0x118] sm:$0xff]  ;;  %v3246_v44 = vld [vmem:[#allocation11 + $0x88] sm:$0xff] }
  0x67   : > { %v3265_v34 = vld [vmem:[#allocation11 + $0x120] sm:$0xff]  ;;  %v3254_v48 = vld [vmem:[#allocation11 + $0xc8] sm:$0xff] }
  0x68   : > { %786 = vmatpush.bf16.msra.mxu0 %v3181_v29  ;;  %v3245_v52 = vld [vmem:[#allocation11 + $0x80] sm:$0xff]  ;;  %v3262_v56 = vld [vmem:[#allocation11 + $0x108] sm:$0xff] }
  0x69   : > { %800 = vmatpush.bf16.msra.mxu1 %v3189_v30  ;;  %v3248_v30 = vld [vmem:[#allocation11 + $0x98] sm:$0xff] }
  0x6a   : > { %814 = vmatpush.bf16.msra.mxu2 %v3197_v31  ;;  %1040 = vmatpush.bf16.msra.mxu3 %v3206_v60 }
  0x6b   : > { %787 = vmatmul.bf16.vlgmr.msra.gmra.mxu0 %v580_v38  ;;  %v3238_v38 = vld [vmem:[#allocation11 + $0x48] sm:$0xff] }
  0x6c   : > { %1048 = vmatpush.bf16.msrb.mxu0 %v3220_v36  ;;  %801 = vmatmul.bf16.vlgmr.msra.gmra.mxu1 %v4029_v39  ;;  %v3247_v36 = vld [vmem:[#allocation11 + $0x90] sm:$0xff] }
  0x6d   : > { %1062 = vmatpush.bf16.msrb.mxu1 %v3228_v37  ;;  %815 = vmatmul.bf16.vlgmr.msra.gmra.mxu2 %v582_v40  ;;  %v3255_v40 = vld [vmem:[#allocation11 + $0xd0] sm:$0xff] }
  0x6e   : > { %1427 = vmatpush.bf16.msrb.mxu2 %v3236_v45  ;;  %1041 = vmatpush.bf16.msra.mxu3 %v3205_v1 }
  0x70   : > { %1049 = vmatpush.bf16.msrb.mxu0 %v3219_v42 }
  0x71   : > { %1063 = vmatpush.bf16.msrb.mxu1 %v3227_v43 }
  0x72   : > { %1428 = vmatpush.bf16.msrb.mxu2 %v3235_v49  ;;  %1441 = vmatpush.bf16.msrb.mxu3 %v3244_v3  ;;  %v3263_v49 = vld [vmem:[#allocation11 + $0x110] sm:$0xff] }
  0x74   : > { %1050 = vmatpush.bf16.msrb.mxu0 %v3218_v46 }
  0x75   : > { %1064 = vmatpush.bf16.msrb.mxu1 %v3226_v47  ;;  %v3237_v47 = vld [vmem:[#allocation11 + $0x40] sm:$0xff] }
  0x76   : > { %1429 = vmatpush.bf16.msrb.mxu2 %v3234_v53  ;;  %1442 = vmatpush.bf16.msrb.mxu3 %v3243_v7 }
  0x78   : > { %1051 = vmatpush.bf16.msrb.mxu0 %v3217_v50 }
  0x79   : > { %1065 = vmatpush.bf16.msrb.mxu1 %v3225_v51 }
  0x7a   : > { %1430 = vmatpush.bf16.msrb.mxu2 %v3233_v57  ;;  %1443 = vmatpush.bf16.msrb.mxu3 %v3242_v14 }
  0x7c   : > { %1052 = vmatpush.bf16.msrb.mxu0 %v3216_v54 }
  0x7d   : > { %1066 = vmatpush.bf16.msrb.mxu1 %v3224_v55  ;;  %v3253_v55 = vld [vmem:[#allocation11 + $0xc0] sm:$0xff] }
  0x7e   : > { %1431 = vmatpush.bf16.msrb.mxu2 %v3232_v61  ;;  %1444 = vmatpush.bf16.msrb.mxu3 %v3241_v20  ;;  %v3275_v20 = vld [vmem:[#allocation12 + $0x30] sm:$0xff] }
  0x80   : > { %1053 = vmatpush.bf16.msrb.mxu0 %v3215_v58 }
  0x81   : > { %1067 = vmatpush.bf16.msrb.mxu1 %v3223_v59  ;;  %v3261_v59 = vld [vmem:[#allocation11 + $0x100] sm:$0xff] }
  0x82   : > { %1432 = vmatpush.bf16.msrb.mxu2 %v3231_v2  ;;  %1445 = vmatpush.bf16.msrb.mxu3 %v3240_v25  ;;  %v3284_v25 = vld [vmem:[#allocation12 + $0x78] sm:$0xff] }
  0x84   : > { %1054 = vmatpush.bf16.msrb.mxu0 %v3214_v62 }
  0x85   : > { %1068 = vmatpush.bf16.msrb.mxu1 %v3222_v63 }
  0x86   : > { %1433 = vmatpush.bf16.msrb.mxu2 %v3230_v8  ;;  %1446 = vmatpush.bf16.msrb.mxu3 %v3239_v32  ;;  %v3271_v32 = vld [vmem:[#allocation12 + $0x10] sm:$0xff] }
  0x88   : > { %1055 = vmatpush.bf16.msrb.mxu0 %v3213_v4 }
  0x89   : > { %1069 = vmatpush.bf16.msrb.mxu1 %v3221_v5 }
  0x8a   : > { %1434 = vmatpush.bf16.msrb.mxu2 %v3229_v13  ;;  %1447 = vmatpush.bf16.msrb.mxu3 %v3238_v38  ;;  %v3270_v38 = vld [vmem:[#allocation12 + $0x8] sm:$0xff] }
  0x8c   : > { %1455 = vmatpush.bf16.msra.mxu0 %v3252_v6 }
  0x8d   : > { %1469 = vmatpush.bf16.msra.mxu1 %v3260_v9 }
  0x8e   : > { %1483 = vmatpush.bf16.msra.mxu2 %v3268_v16  ;;  %1448 = vmatpush.bf16.msrb.mxu3 %v3237_v47  ;;  %v3296_v47 = vld [vmem:[#allocation12 + $0xd8] sm:$0xff] }
  0x90   : > { %1456 = vmatpush.bf16.msra.mxu0 %v3251_v12 }
  0x91   : > { %1470 = vmatpush.bf16.msra.mxu1 %v3259_v15 }
  0x92   : > { %1484 = vmatpush.bf16.msra.mxu2 %v3267_v22  ;;  %v3274_v22 = vld [vmem:[#allocation12 + $0x28] sm:$0xff] }
  0x94   : > { %1457 = vmatpush.bf16.msra.mxu0 %v3250_v17 }
  0x95   : > { %1471 = vmatpush.bf16.msra.mxu1 %v3258_v21  ;;  %v3292_v21 = vld [vmem:[#allocation12 + $0xb8] sm:$0xff] }
  0x96   : > { %1485 = vmatpush.bf16.msra.mxu2 %v3266_v27  ;;  %v3290_v27 = vld [vmem:[#allocation12 + $0xa8] sm:$0xff] }
  0x98   : > { %1458 = vmatpush.bf16.msra.mxu0 %v3249_v24 }
  0x99   : > { %1472 = vmatpush.bf16.msra.mxu1 %v3257_v26  ;;  %v3300_v26 = vld [vmem:[#allocation12 + $0xf8] sm:$0xff] }
  0x9a   : > { %1486 = vmatpush.bf16.msra.mxu2 %v3265_v34 }
  0x9c   : > { %1459 = vmatpush.bf16.msra.mxu0 %v3248_v30  ;;  %v3299_v30 = vld [vmem:[#allocation12 + $0xf0] sm:$0xff] }
  0x9d   : > { %1473 = vmatpush.bf16.msra.mxu1 %v3256_v33 }
  0x9e   : > { %1487 = vmatpush.bf16.msra.mxu2 %v3264_v41  ;;  %v3297_v41 = vld [vmem:[#allocation12 + $0xe0] sm:$0xff] }
  0xa0   : > { %1460 = vmatpush.bf16.msra.mxu0 %v3247_v36  ;;  %v3298_v36 = vld [vmem:[#allocation12 + $0xe8] sm:$0xff] }
  0xa1   : > { %1474 = vmatpush.bf16.msra.mxu1 %v3255_v40  ;;  %v3281_v40 = vld [vmem:[#allocation12 + $0x60] sm:$0xff] }
  0xa2   : > { %1488 = vmatpush.bf16.msra.mxu2 %v3263_v49  ;;  %v3286_v49 = vld [vmem:[#allocation12 + $0x88] sm:$0xff] }
  0xa4   : > { %1461 = vmatpush.bf16.msra.mxu0 %v3246_v44  ;;  %v3269_v44 = vld [vmem:[#allocation12] sm:$0xff] }
  0xa5   : > { %1475 = vmatpush.bf16.msra.mxu1 %v3254_v48  ;;  %v3308_v48 = vld [vmem:[#allocation12 + $0x138] sm:$0xff] }
  0xa6   : > { %1489 = vmatpush.bf16.msra.mxu2 %v3262_v56  ;;  %v3278_v56 = vld [vmem:[#allocation12 + $0x48] sm:$0xff] }
  0xa8   : > { %1462 = vmatpush.bf16.msra.mxu0 %v3245_v52  ;;  %v3307_v52 = vld [vmem:[#allocation12 + $0x130] sm:$0xff] }
  0xa9   : > { %1476 = vmatpush.bf16.msra.mxu1 %v3253_v55 }
  0xaa   : > { %1490 = vmatpush.bf16.msra.mxu2 %v3261_v59  ;;  %v3465_v59 = vld [vmem:[%s4105_s8] ss:$0 sm:$0xff] }
  0xe8   : > { %v788_v28 = vpop.f32.mrf.mxu0 }
  0xe9   : > { %v789_v29 = vadd.f32 %v3464_v23, %v788_v28  ;;  %v802_v31 = vpop.f32.mrf.mxu1  ;;  %v3272_v28 = vld [vmem:[#allocation12 + $0x18] sm:$0xff] }
  0xeb   : > { %v803_v35 = vadd.f32 %v802_v31, %v789_v29  ;;  %v3283_v29 = vld [vmem:[#allocation12 + $0x70] sm:$0xff]  ;;  %v3289_v31 = vld [vmem:[#allocation12 + $0xa0] sm:$0xff] }
  0xf0   : > { %v816_v37 = vpop.f32.mrf.mxu2  ;;  %v790_v43 = vpop.f32.mrf.mxu0 }
  0xf1   : > { %v817_v42 = vadd.f32 %v816_v37, %v803_v35  ;;  %v791_v46 = vadd.f32 %v3464_v23, %v790_v43  ;;  %v804_v51 = vpop.f32.mrf.mxu1  ;;  %v3273_v23 = vld [vmem:[#allocation12 + $0x20] sm:$0xff]  ;;  %v3282_v35 = vld [vmem:[#allocation12 + $0x68] sm:$0xff]  ;;  %v3288_v37 = vld [vmem:[#allocation12 + $0x98] sm:$0xff] }
  0xf3   : > { %vm821_vm2 = vcmp.ge.f32.partialorder %v817_v42, 0.0  ;;  %v823_v45 = vmul.f32 0.01, %v817_v42  ;;  %v805_v53 = vadd.f32 %v804_v51, %v791_v46  ;;  %v3280_v46 = vld [vmem:[#allocation12 + $0x58] sm:$0xff]  ;;  %v3295_v51 = vld [vmem:[#allocation12 + $0xd0] sm:$0xff] }
  0xf5   : > { %v825_v50 = vsel %vm821_vm2, %v817_v42, %v823_v45  ;;  %v3287_v42 = vld [vmem:[#allocation12 + $0x90] sm:$0xff] }
  0xf6   : > { %827 = vst [vmem:[#allocation2 + $0x8] sm:$0xff] %v825_v50 }
  0xf8   : > { %v818_v54 = vpop.f32.mrf.mxu2 }
  0xf9   : > { %v819_v57 = vadd.f32 %v818_v54, %v805_v53  ;;  %v3285_v53 = vld [vmem:[#allocation12 + $0x80] sm:$0xff] }
  0xfb   : > { %vm822_vm3 = vcmp.ge.f32.partialorder %v819_v57, 0.0  ;;  %v824_v58 = vmul.f32 0.01, %v819_v57 }
  0xfd   : > { %v826_v60 = vsel %vm822_vm3, %v819_v57, %v824_v58  ;;  %v829_v62 = vld [vmem:[#allocation2 + $0x6] sm:$0xff] }
  0xfe   : > { %828 = vst [vmem:[#allocation2 + $0x10] sm:$0xff] %v826_v60  ;;  %v836_v61 = vpack.c.bf16 %v826_v60, %v825_v50  ;;  %v3279_v50 = vld [vmem:[#allocation12 + $0x50] sm:$0xff]  ;;  %v3294_v57 = vld [vmem:[#allocation12 + $0xc8] sm:$0xff]  ;;  %v3277_v60 = vld [vmem:[#allocation12 + $0x40] sm:$0xff] }
  0xff   : > { %v3306_v58 = vld [vmem:[#allocation12 + $0x128] sm:$0xff] }
 0x100   : > { %1056 = vmatmul.bf16.vlgmr.msrb.gmra.mxu0 %v836_v61  ;;  %v3293_v61 = vld [vmem:[#allocation12 + $0xc0] sm:$0xff] }
 0x101   : > { %1859 = vmatpush.bf16.msrb.mxu0 %v3284_v25 }
 0x105   : > { %v830_v63 = vld [vmem:[#allocation2 + $0xe] sm:$0xff]  ;;  %1860 = vmatpush.bf16.msrb.mxu0 %v3283_v29 }
 0x106   : > { %v833_v1 = vld [vmem:[#allocation2 + $0xa] sm:$0xff]  ;;  %v834_v2 = vld [vmem:[#allocation2 + $0x12] sm:$0xff]  ;;  %v835_v3 = vpack.c.bf16 %v830_v63, %v829_v62  ;;  %v3305_v62 = vld [vmem:[#allocation12 + $0x120] sm:$0xff] }
 0x107   : > { %v837_v4 = vpack.c.bf16 %v834_v2, %v833_v1  ;;  %1086 = vst [vmem:[#allocation2 + $0x8] sm:$0xff] %v4020_v18 }
 0x108   : > { %1087 = vst [vmem:[#allocation2 + $0x10] sm:$0xff] %v4023_v19  ;;  %1042 = vmatmul.bf16.vlgmr.msra.gmra.mxu3 %v835_v3  ;;  %v3276_v19 = vld [vmem:[#allocation12 + $0x38] sm:$0xff] }
 0x109   : > { %1070 = vmatmul.bf16.vlgmr.msrb.gmra.mxu1 %v837_v4  ;;  %1845 = vmatpush.bf16.msra.mxu3 %v3276_v19 }
 0x10a   : > { %1873 = vmatpush.bf16.msrb.mxu1 %v3292_v21  ;;  %1861 = vmatpush.bf16.msrb.mxu0 %v3282_v35  ;;  %v3301_v21 = vld [vmem:[#allocation12 + $0x100] sm:$0xff] }
 0x10d   : > { %1846 = vmatpush.bf16.msra.mxu3 %v3275_v20 }
 0x10e   : > { %v1088_v5 = vld [vmem:[#allocation2 + $0x6] sm:$0xff]  ;;  %1862 = vmatpush.bf16.msrb.mxu0 %v3281_v40 }
 0x10f   : > { %v1089_v6 = vld [vmem:[#allocation2 + $0xe] sm:$0xff] }
 0x110   : > { %v1098_v7 = vpack.c.bf16 %v1089_v6, %v1088_v5  ;;  %v1090_v8 = vld [vmem:[#allocation2 + $0x7] sm:$0xff]  ;;  %1463 = vmatmul.bf16.vlgmr.msra.gmra.mxu0 %v4029_v39  ;;  %v1091_v9 = vld [vmem:[#allocation2 + $0xf] sm:$0xff]  ;;  %v3304_v5 = vld [vmem:[#allocation12 + $0x118] sm:$0xff] }
 0x111   : > { %v1094_v12 = vld [vmem:[#allocation2 + $0x9] sm:$0xff]  ;;  %v1095_v13 = vld [vmem:[#allocation2 + $0x11] sm:$0xff]  ;;  %v1099_v14 = vpack.c.bf16 %v1091_v9, %v1090_v8  ;;  %1847 = vmatpush.bf16.msra.mxu3 %v3274_v22 }
 0x112   : > { %1435 = vmatmul.bf16.vlgmr.msrb.gmra.mxu2 %v1098_v7  ;;  %v1101_v15 = vpack.c.bf16 %v1095_v13, %v1094_v12  ;;  %v1096_v16 = vld [vmem:[#allocation2 + $0xa] sm:$0xff]  ;;  %v1097_v18 = vld [vmem:[#allocation2 + $0x12] sm:$0xff]  ;;  %1863 = vmatpush.bf16.msrb.mxu0 %v3280_v46 }
 0x113   : > { %v1102_v17 = vpack.c.bf16 %v1097_v18, %v1096_v16  ;;  %v3291_v39 = vld [vmem:[#allocation12 + $0xb0] sm:$0xff]  ;;  %1887 = vmatpush.bf16.msrb.mxu2 %v3300_v26  ;;  %v3302_v16 = vld [vmem:[#allocation12 + $0x108] sm:$0xff] }
 0x114   : > { %1874 = vmatpush.bf16.msrb.mxu1 %v3291_v39  ;;  %v3303_v8 = vld [vmem:[#allocation12 + $0x110] sm:$0xff] }
 0x115   : > { %1848 = vmatpush.bf16.msra.mxu3 %v3273_v23  ;;  %v3311_v46 = vld [vmem:[#allocation14 + $0x10] sm:$0xff] }
 0x116   : > { %1864 = vmatpush.bf16.msrb.mxu0 %v3279_v50  ;;  %v3309_v50 = vld [vmem:[#allocation14] sm:$0xff] }
 0x117   : > { %1888 = vmatpush.bf16.msrb.mxu2 %v3299_v30 }
 0x118   : > { %1449 = vmatmul.bf16.vlgmr.msrb.gmra.mxu3 %v1099_v14  ;;  %1875 = vmatpush.bf16.msrb.mxu1 %v3290_v27  ;;  %v3316_v27 = vld [vmem:[#allocation14 + $0x38] sm:$0xff] }
 0x119   : > { %1477 = vmatmul.bf16.vlgmr.msra.gmra.mxu1 %v1101_v15  ;;  %1849 = vmatpush.bf16.msra.mxu3 %v3272_v28 }
 0x11a   : > { %1865 = vmatpush.bf16.msrb.mxu0 %v3278_v56  ;;  %v3339_v56 = vld [vmem:[#allocation14 + $0xf0] sm:$0xff] }
 0x11b   : > { %1889 = vmatpush.bf16.msrb.mxu2 %v3298_v36 }
 0x11c   : > { %1876 = vmatpush.bf16.msrb.mxu1 %v3289_v31 }
 0x11d   : > { %1850 = vmatpush.bf16.msra.mxu3 %v3271_v32 }
 0x11e   : > { %1866 = vmatpush.bf16.msrb.mxu0 %v3277_v60  ;;  %v3338_v60 = vld [vmem:[#allocation14 + $0xe8] sm:$0xff] }
 0x11f   : > { %1890 = vmatpush.bf16.msrb.mxu2 %v3297_v41 }
 0x120   : > { %1877 = vmatpush.bf16.msrb.mxu1 %v3288_v37 }
 0x121   : > { %1851 = vmatpush.bf16.msra.mxu3 %v3270_v38 }
 0x122   : > { %1491 = vmatmul.bf16.vlgmr.msra.gmra.mxu2 %v1102_v17  ;;  %2260 = vmatpush.bf16.msra.mxu0 %v3316_v27 }
 0x123   : > { %1891 = vmatpush.bf16.msrb.mxu2 %v3296_v47  ;;  %v3332_v47 = vld [vmem:[#allocation14 + $0xb8] sm:$0xff] }
 0x124   : > { %1878 = vmatpush.bf16.msrb.mxu1 %v3287_v42 }
 0x125   : > { %1852 = vmatpush.bf16.msra.mxu3 %v3269_v44  ;;  %v3313_v44 = vld [vmem:[#allocation14 + $0x20] sm:$0xff] }
 0x127   : > { %1892 = vmatpush.bf16.msrb.mxu2 %v3295_v51  ;;  %v3324_v51 = vld [vmem:[#allocation14 + $0x78] sm:$0xff] }
 0x128   : > { %1879 = vmatpush.bf16.msrb.mxu1 %v3286_v49  ;;  %v3331_v49 = vld [vmem:[#allocation14 + $0xb0] sm:$0xff] }
 0x129   : > { %1901 = vmatpush.bf16.msrb.mxu3 %v3308_v48  ;;  %v3310_v48 = vld [vmem:[#allocation14 + $0x8] sm:$0xff] }
 0x12b   : > { %1893 = vmatpush.bf16.msrb.mxu2 %v3294_v57  ;;  %v3329_v57 = vld [vmem:[#allocation14 + $0xa0] sm:$0xff] }
 0x12c   : > { %1880 = vmatpush.bf16.msrb.mxu1 %v3285_v53  ;;  %v3330_v53 = vld [vmem:[#allocation14 + $0xa8] sm:$0xff] }
 0x12d   : > { %1902 = vmatpush.bf16.msrb.mxu3 %v3307_v52  ;;  %v3340_v52 = vld [vmem:[#allocation14 + $0xf8] sm:$0xff] }
 0x12f   : > { %1894 = vmatpush.bf16.msrb.mxu2 %v3293_v61  ;;  %v3328_v61 = vld [vmem:[#allocation14 + $0x98] sm:$0xff] }
 0x130   : > { %2274 = vmatpush.bf16.msra.mxu1 %v3324_v51 }
 0x131   : > { %1903 = vmatpush.bf16.msrb.mxu3 %v3306_v58  ;;  %v3347_v58 = vld [vmem:[#allocation14 + $0x130] sm:$0xff] }
 0x133   : > { %2288 = vmatpush.bf16.msra.mxu2 %v3332_v47 }
 0x135   : > { %1904 = vmatpush.bf16.msrb.mxu3 %v3305_v62  ;;  %v3346_v62 = vld [vmem:[#allocation14 + $0x128] sm:$0xff] }
 0x137   : > { %2289 = vmatpush.bf16.msra.mxu2 %v3331_v49 }
 0x139   : > { %1905 = vmatpush.bf16.msrb.mxu3 %v3304_v5  ;;  %v3336_v5 = vld [vmem:[#allocation14 + $0xd8] sm:$0xff] }
 0x13b   : > { %2290 = vmatpush.bf16.msra.mxu2 %v3330_v53  ;;  %v3467_v53 = vld [vmem:[%s4109_s12] ss:$0 sm:$0xff] }
 0x13d   : > { %1906 = vmatpush.bf16.msrb.mxu3 %v3303_v8  ;;  %v3319_v8 = vld [vmem:[#allocation14 + $0x50] sm:$0xff] }
 0x13f   : > { %2291 = vmatpush.bf16.msra.mxu2 %v3329_v57 }
 0x141   : > { %1907 = vmatpush.bf16.msrb.mxu3 %v3302_v16  ;;  %v3466_v16 = vld [vmem:[%s4107_s10] ss:$0 sm:$0xff] }
 0x143   : > { %2292 = vmatpush.bf16.msra.mxu2 %v3328_v61 }
 0x145   : > { %1908 = vmatpush.bf16.msrb.mxu3 %v3301_v21  ;;  %v3333_v21 = vld [vmem:[#allocation14 + $0xc0] sm:$0xff] }
 0x17d   : > { %v1057_v24 = vpop.f32.mrf.mxu0 }
 0x185   : > { %v1059_v34 = vpop.f32.mrf.mxu0 }
 0x186   : > { %v1071_v33 = vpop.f32.mrf.mxu1 }
 0x18b   : > { %v1043_v43 = vpop.f32.mrf.mxu3 }
 0x18c   : > { %v3314_v43 = vld [vmem:[#allocation14 + $0x28] sm:$0xff] }
 0x18d   : > { %v1464_v3 = vpop.f32.mrf.mxu0 }
 0x18e   : > { %v1073_v45 = vpop.f32.mrf.mxu1 }
 0x18f   : > { %v3312_v45 = vld [vmem:[#allocation14 + $0x18] sm:$0xff] }
 0x193   : > { %v1045_v54 = vpop.f32.mrf.mxu3 }
 0x194   : > { %v3348_v54 = vld [vmem:[#allocation14 + $0x138] sm:$0xff] }
 0x195   : > { %v1436_v55 = vpop.f32.mrf.mxu2  ;;  %v1466_v17 = vpop.f32.mrf.mxu0 }
 0x196   : > { %v1437_v63 = vadd.f32 %v3465_v59, %v1436_v55  ;;  %v1478_v7 = vpop.f32.mrf.mxu1  ;;  %v3323_v55 = vld [vmem:[#allocation14 + $0x70] sm:$0xff] }
 0x197   : > { %2275 = vmatpush.bf16.msra.mxu1 %v3323_v55 }
 0x19b   : > { %v1450_v1 = vpop.f32.mrf.mxu3 }
 0x19c   : > { %v1451_v2 = vadd.f32 %v1450_v1, %v1437_v63  ;;  %v3321_v63 = vld [vmem:[#allocation14 + $0x60] sm:$0xff] }
 0x19d   : > { %v1438_v4 = vpop.f32.mrf.mxu2  ;;  %v3337_v1 = vld [vmem:[#allocation14 + $0xe0] sm:$0xff] }
 0x19e   : > { %v1465_v6 = vadd.f32 %v1464_v3, %v1451_v2  ;;  %v1439_v9 = vadd.f32 %v3465_v59, %v1438_v4  ;;  %v1480_v39 = vpop.f32.mrf.mxu1  ;;  %v3322_v59 = vld [vmem:[#allocation14 + $0x68] sm:$0xff]  ;;  %v3327_v2 = vld [vmem:[#allocation14 + $0x90] sm:$0xff]  ;;  %v3345_v3 = vld [vmem:[#allocation14 + $0x120] sm:$0xff] }
 0x19f   : > { %2276 = vmatpush.bf16.msra.mxu1 %v3322_v59  ;;  %2293 = vmatpush.bf16.msra.mxu2 %v3327_v2  ;;  %v3320_v4 = vld [vmem:[#allocation14 + $0x58] sm:$0xff] }
 0x1a0   : > { %v1479_v12 = vadd.f32 %v1478_v7, %v1465_v6  ;;  %v3326_v6 = vld [vmem:[#allocation14 + $0x88] sm:$0xff]  ;;  %v3344_v7 = vld [vmem:[#allocation14 + $0x118] sm:$0xff] }
 0x1a3   : > { %v1452_v13 = vpop.f32.mrf.mxu3  ;;  %2277 = vmatpush.bf16.msra.mxu1 %v3321_v63  ;;  %2294 = vmatpush.bf16.msra.mxu2 %v3326_v6 }
 0x1a4   : > { %v1453_v14 = vadd.f32 %v1452_v13, %v1439_v9  ;;  %v3335_v9 = vld [vmem:[#allocation14 + $0xd0] sm:$0xff] }
 0x1a5   : > { %v1492_v15 = vpop.f32.mrf.mxu2  ;;  %v3343_v13 = vld [vmem:[#allocation14 + $0x110] sm:$0xff] }
 0x1a6   : > { %v1493_v18 = vadd.f32 %v1492_v15, %v1479_v12  ;;  %v1467_v19 = vadd.f32 %v1466_v17, %v1453_v14  ;;  %v3325_v12 = vld [vmem:[#allocation14 + $0x80] sm:$0xff]  ;;  %v3318_v14 = vld [vmem:[#allocation14 + $0x48] sm:$0xff] }
 0x1a7   : > { %2278 = vmatpush.bf16.msra.mxu1 %v3320_v4  ;;  %v3334_v15 = vld [vmem:[#allocation14 + $0xc8] sm:$0xff]  ;;  %2295 = vmatpush.bf16.msra.mxu2 %v3325_v12 }
 0x1a8   : > { %v4042_v20 = vadd.f32 %v1493_v18, %v4011_v10  ;;  %v1481_v23 = vadd.f32 %v1480_v39, %v1467_v19  ;;  %v3315_v10 = vld [vmem:[#allocation14 + $0x30] sm:$0xff]  ;;  %v3342_v17 = vld [vmem:[#allocation14 + $0x108] sm:$0xff]  ;;  %v3317_v19 = vld [vmem:[#allocation14 + $0x40] sm:$0xff] }
 0x1a9   : > { %2261 = vmatpush.bf16.msra.mxu0 %v3315_v10 }
 0x1aa   : > { %vm1499_vm4 = vcmp.ge.f32.partialorder %v4042_v20, 0.0  ;;  %v1501_v22 = vmul.f32 0.01, %v4042_v20 }
 0x1ab   : > { %2279 = vmatpush.bf16.msra.mxu1 %v3319_v8 }
 0x1ac   : > { %v1503_v24 = vsel %vm1499_vm4, %v4042_v20, %v1501_v22 }
 0x1ad   : > { %1505 = vst [vmem:[#allocation2 + $0x8] sm:$0xff] %v1503_v24  ;;  %v1494_v25 = vpop.f32.mrf.mxu2  ;;  %2262 = vmatpush.bf16.msra.mxu0 %v3314_v43 }
 0x1ae   : > { %v1495_v26 = vadd.f32 %v1494_v25, %v1481_v23  ;;  %v3341_v23 = vld [vmem:[#allocation14 + $0x100] sm:$0xff] }
 0x1af   : > { %2280 = vmatpush.bf16.msra.mxu1 %v3318_v14 }
 0x1b0   : > { %v4048_v28 = vadd.f32 %v1495_v26, %v4013_v11 }
 0x1b1   : > { %2263 = vmatpush.bf16.msra.mxu0 %v3313_v44 }
 0x1b2   : > { %vm1500_vm5 = vcmp.ge.f32.partialorder %v4048_v28, 0.0  ;;  %v1502_v29 = vmul.f32 0.01, %v4048_v28 }
 0x1b3   : > { %2281 = vmatpush.bf16.msra.mxu1 %v3317_v19 }
 0x1b4   : > { %v1504_v30 = vsel %vm1500_vm5, %v4048_v28, %v1502_v29  ;;  %v1507_v32 = vld [vmem:[#allocation2 + $0x4] sm:$0xff] }
 0x1b5   : > { %1506 = vst [vmem:[#allocation2 + $0x10] sm:$0xff] %v1504_v30  ;;  %v1518_v31 = vpack.c.bf16 %v1504_v30, %v1503_v24  ;;  %v1509_v33 = vld [vmem:[#allocation2 + $0x6] sm:$0xff]  ;;  %2264 = vmatpush.bf16.msra.mxu0 %v3312_v45 }
 0x1b7   : > { %1881 = vmatmul.bf16.vlgmr.msrb.gmra.mxu1 %v1518_v31 }
 0x1b9   : > { %2265 = vmatpush.bf16.msra.mxu0 %v3311_v46 }
 0x1bc   : > { %v1508_v34 = vld [vmem:[#allocation2 + $0xc] sm:$0xff]  ;;  %v1515_v41 = vld [vmem:[#allocation2 + $0x14] sm:$0xff] }
 0x1bd   : > { %v1510_v35 = vld [vmem:[#allocation2 + $0xe] sm:$0xff]  ;;  %v1516_v37 = vpack.c.bf16 %v1508_v34, %v1507_v32  ;;  %v1520_v42 = vpack.c.bf16 %v1515_v41, %v1508_v34  ;;  %2266 = vmatpush.bf16.msra.mxu0 %v3310_v48 }
 0x1be   : > { %v1513_v36 = vld [vmem:[#allocation2 + $0xa] sm:$0xff]  ;;  %v1517_v11 = vpack.c.bf16 %v1510_v35, %v1509_v33  ;;  %v1514_v38 = vld [vmem:[#allocation2 + $0x12] sm:$0xff] }
 0x1bf   : > { %v1519_v40 = vpack.c.bf16 %v1514_v38, %v1513_v36  ;;  %1853 = vmatmul.bf16.vlgmr.msra.gmra.mxu3 %v1516_v37 }
 0x1c0   : > { %1867 = vmatmul.bf16.vlgmr.msrb.gmra.mxu0 %v1517_v11  ;;  %2302 = vmatpush.bf16.msra.mxu3 %v3340_v52 }
 0x1c1   : > { %1895 = vmatmul.bf16.vlgmr.msrb.gmra.mxu2 %v1519_v40  ;;  %2267 = vmatpush.bf16.msra.mxu0 %v3309_v50 }
 0x1c4   : > { %2303 = vmatpush.bf16.msra.mxu3 %v3339_v56 }
 0x1c5   : > { %2316 = vmatpush.bf16.msrb.mxu0 %v3348_v54 }
 0x1c8   : > { %2304 = vmatpush.bf16.msra.mxu3 %v3338_v60 }
 0x1c9   : > { %2317 = vmatpush.bf16.msrb.mxu0 %v3347_v58 }
 0x1cc   : > { %2305 = vmatpush.bf16.msra.mxu3 %v3337_v1 }
 0x1cd   : > { %2318 = vmatpush.bf16.msrb.mxu0 %v3346_v62 }
 0x1cf   : > { %1909 = vmatmul.bf16.vlgmr.msrb.gmra.mxu3 %v1520_v42 }
 0x1d0   : > { %2306 = vmatpush.bf16.msra.mxu3 %v3336_v5 }
 0x1d1   : > { %2319 = vmatpush.bf16.msrb.mxu0 %v3345_v3 }
 0x1d4   : > { %2307 = vmatpush.bf16.msra.mxu3 %v3335_v9 }
 0x1d5   : > { %2320 = vmatpush.bf16.msrb.mxu0 %v3344_v7 }
 0x1d8   : > { %2308 = vmatpush.bf16.msra.mxu3 %v3334_v15 }
 0x1d9   : > { %2321 = vmatpush.bf16.msrb.mxu0 %v3343_v13 }
 0x1dc   : > { %2309 = vmatpush.bf16.msra.mxu3 %v3333_v21 }
 0x1dd   : > { %2322 = vmatpush.bf16.msrb.mxu0 %v3342_v17 }
 0x1e1   : > { %2323 = vmatpush.bf16.msrb.mxu0 %v3341_v23 }
 0x234   : > { %v1882_v25 = vpop.f32.mrf.mxu1 }
 0x23c   : > { %v1884_v35 = vpop.f32.mrf.mxu1 }
 0x23d   : > { %v1868_v39 = vpop.f32.mrf.mxu0 }
 0x242   : > { %v1854_v18 = vpop.f32.mrf.mxu3 }
 0x243   : > { %v1855_v22 = vadd.f32 %v3466_v16, %v1854_v18 }
 0x244   : > { %v1896_v29 = vpop.f32.mrf.mxu2 }
 0x245   : > { %v1869_v24 = vadd.f32 %v1868_v39, %v1855_v22  ;;  %v1870_v30 = vpop.f32.mrf.mxu0 }
 0x247   : > { %v1883_v27 = vadd.f32 %v1882_v25, %v1869_v24 }
 0x249   : > { %v1897_v31 = vadd.f32 %v1896_v29, %v1883_v27 }
 0x24a   : > { %v1856_v26 = vpop.f32.mrf.mxu3 }
 0x24b   : > { %v1857_v10 = vadd.f32 %v3466_v16, %v1856_v26 }
 0x24c   : > { %v1898_v38 = vpop.f32.mrf.mxu2 }
 0x24d   : > { %v1871_v32 = vadd.f32 %v1870_v30, %v1857_v10 }
 0x24f   : > { %v1885_v36 = vadd.f32 %v1884_v35, %v1871_v32 }
 0x251   : > { %v1899_v41 = vadd.f32 %v1898_v38, %v1885_v36 }
 0x252   : > { %v1910_v33 = vpop.f32.mrf.mxu3 }
 0x253   : > { %v1911_v34 = vadd.f32 %v1910_v33, %v1897_v31 }
 0x255   : > { %vm1915_vm6 = vcmp.ge.f32.partialorder %v1911_v34, 0.0  ;;  %v1917_v37 = vmul.f32 0.01, %v1911_v34 }
 0x257   : > { %v1919_v11 = vsel %vm1915_vm6, %v1911_v34, %v1917_v37 }
 0x258   : > { %1921 = vst [vmem:[#allocation2 + $0x8] sm:$0xff] %v1919_v11  ;;  %v1931_v40 = vpack.c.bf16 %v1919_v11, %v3768_v0 }
 0x25a   : > { %v1912_v42 = vpop.f32.mrf.mxu3  ;;  %2268 = vmatmul.bf16.vlgmr.msra.gmra.mxu0 %v1931_v40 }
 0x25b   : > { %v1913_v43 = vadd.f32 %v1912_v42, %v1899_v41 }
 0x25d   : > { %vm1916_vm7 = vcmp.ge.f32.partialorder %v1913_v43, 0.0  ;;  %v1918_v44 = vmul.f32 0.01, %v1913_v43 }
 0x25f   : > { %v1920_v45 = vsel %vm1916_vm7, %v1913_v43, %v1918_v44  ;;  %v1925_v47 = vld [vmem:[#allocation2 + $0x4] sm:$0xff] }
 0x260   : > { %1922 = vst [vmem:[#allocation2 + $0x10] sm:$0xff] %v1920_v45  ;;  %v1933_v46 = vpack.c.bf16 %v1920_v45, %v1919_v11  ;;  %v1935_v52 = vpack.c.bf16 0.0, %v1920_v45 }
 0x262   : > { %2296 = vmatmul.bf16.vlgmr.msra.gmra.mxu2 %v1933_v46 }
 0x267   : > { %v1926_v48 = vld [vmem:[#allocation2 + $0xc] sm:$0xff]  ;;  %v1928_v49 = vld [vmem:[#allocation2 + $0x14] sm:$0xff] }
 0x268   : > { %v1932_v50 = vpack.c.bf16 %v1926_v48, %v1925_v47  ;;  %v1934_v51 = vpack.c.bf16 %v1928_v49, %v1926_v48 }
 0x26a   : > { %2282 = vmatmul.bf16.vlgmr.msra.gmra.mxu1 %v1932_v50  ;;  %2310 = vmatmul.bf16.vlgmr.msra.gmra.mxu3 %v1934_v51 }
 0x26b   : > { %2324 = vmatmul.bf16.vlgmr.msrb.gmra.mxu0 %v1935_v52 }
 0x2d7   : > { %v2269_v0 = vpop.f32.mrf.mxu0 }
 0x2d8   : > { %v2270_v55 = vadd.f32 %v3467_v53, %v2269_v0 }
 0x2df   : > { %v2271_v54 = vpop.f32.mrf.mxu0 }
 0x2e0   : > { %v2272_v62 = vadd.f32 %v3467_v53, %v2271_v54 }
 0x2e5   : > { %v2297_v58 = vpop.f32.mrf.mxu2 }
 0x2e7   : > { %v2283_v56 = vpop.f32.mrf.mxu1 }
 0x2e8   : > { %v2284_v57 = vadd.f32 %v2283_v56, %v2270_v55  ;;  %v2325_v61 = vpop.f32.mrf.mxu0 }
 0x2ea   : > { %v2298_v59 = vadd.f32 %v2297_v58, %v2284_v57 }
 0x2ed   : > { %v2311_v60 = vpop.f32.mrf.mxu3  ;;  %v2299_v5 = vpop.f32.mrf.mxu2 }
 0x2ee   : > { %v2312_v63 = vadd.f32 %v2311_v60, %v2298_v59 }
 0x2ef   : > { %v2285_v1 = vpop.f32.mrf.mxu1 }
 0x2f0   : > { %v2286_v2 = vadd.f32 %v2285_v1, %v2272_v62  ;;  %v2326_v3 = vadd.f32 %v2325_v61, %v2312_v63  ;;  %v2327_v12 = vpop.f32.mrf.mxu0 }
 0x2f2   : > { %v2330_v4 = vadd.f32 %v2326_v3, %v4042_v20  ;;  %v2300_v7 = vadd.f32 %v2299_v5, %v2286_v2 }
 0x2f4   : > { %v2332_v6 = vmul.f32 0.5, %v2330_v4 }
 0x2f5   : > { %v2313_v8 = vpop.f32.mrf.mxu3 }
 0x2f6   : > { %2334 = vst [vmem:[%s559_s11] sm:$0xff] %v2332_v6  ;;  %v2314_v9 = vadd.f32 %v2313_v8, %v2300_v7 }
 0x2f8   : > { %v2328_v13 = vadd.f32 %v2327_v12, %v2314_v9 }
 0x2fa   : > { %v2331_v20 = vadd.f32 %v2328_v13, %v4048_v28 }
 0x2fc   : > { %v2333_v14 = vmul.f32 0.5, %v2331_v20 }
 0x2fe   : > { %2335 = vst [vmem:[%s559_s11 + $0x8] sm:$0xff] %v2333_v14 }
 0x2ff   : > { %3705 = shalt.err (!%p3702_p9)
}
 0x300   : > { %s3769_s17 = smov 128   ;;  %s3770_s20 = smov 8  }
 0x301   : > { %3376 = dma.vmem_to_hbm [thread:$0]  (%p3956_p4), %s2350_s21, 256, %s2352_s3, %s2337_s30, %s3769_s17, %s3769_s17, %s3770_s20  }
 0x302 PF: > { %s2366_s6 = sand.u32 1, %s3744_s23   ;;  %p4130_p10 = scmp.ge.s32.totalorder %s3756_s26, 2 }
 0x303   : > { %s2367_s4 = scalar_lea.sflag [#allocation5], %s2366_s6 }
 0x304   : > { %p3402_p13 = pnand %p4130_p10, %p3960_p6 }
 0x306   : > { %p3403_p11 = pneg %p3402_p13 }
 0x308   : > { %3739 = dma.done.wait (%p3403_p11), %s2367_s4, 256  }
 0x309   : > { %3741 = vsyncadd (%p3403_p11), %s2367_s4, 4294967040  ;;  %p29_p0 = scmp.ge.s32.totalorder %s3930_s16, 4   ;;  %s4131_s23 = smov %s3748_s24 }
 0x30a   : > { %s4132_s24 = smov %s3752_s25  ;;  %s4133_s25 = smov %s3941_s27 }
 0x30b   : > { %s4134_s26 = smov %s3930_s16  ;;  %31 = sbr.rel (!%p29_p0) target bundleno = 15 (0xf), region = 141 }
 0x310   :  { %2373 = vsyncpa [#allocation4], 1 }
 0x311   :  { %2375 = vsyncpa [#allocation4 + $0x1], 1 }
 0x312   :  { %2376 = vsyncpa [#allocation7], 1 }
 0x313   :  { %2377 = vsyncpa [#allocation10], 1 }
 0x314   :  { %2378 = vsyncpa [#allocation13], 1 }
 0x315   :  { %2379 = vsyncpa [#allocation5], 1 }
 0x316   :  { %2381 = vsyncpa [#allocation5 + $0x1], 1 }

</bundles_post_ra>
